<compile_context>
chip_gen: v5e
topology: v5e:2x2
jax: 0.10.0
libtpu: 0.0.40
codegen_flags: <defaults>
</compile_context>

<pallas_src>
import functools

import jax
import jax.numpy as jnp
from jax import lax
from jax.experimental import pallas as pl
from jax.experimental.pallas import tpu as pltpu


def _round_up(v, m):
    return -(-v // m) * m


# ----------------------------------------------------------------------------
# Pallas kernel
# ----------------------------------------------------------------------------
def _stablernn_kernel(x_ref, u_wT_ref, u_b_ref, wT_ref, c_wT_ref, c_b_ref,
                      out_ref, h_last_ref,
                      h_ref, buf_ref,
                      *, dt, activation, seq_len, chunk, unroll):
    """One (batch_block, seq_chunk) grid step of the StableRNN recurrence.

    x_ref      : (Tq, Bb, D_in_p)   offchain dtype  current sequence chunk
    u_wT_ref   : (D_in_p, H_p)      offchain dtype  U.weight^T   (zero padded)
    u_b_ref    : (1, H_p)           f32
    wT_ref     : (H_p, H_p)         recurrent dtype expm(W_log)^T (zero padded)
    c_wT_ref   : (H_p, D_out_p)     offchain dtype  c.weight^T   (zero padded)
    c_b_ref    : (1, D_out_p)       f32
    out_ref    : (Tq, Bb, D_out_p)  out dtype       output chunk
    h_last_ref : (Bb, H_p)          f32             final hidden state (blk)
    h_ref      : (Bb, H_p)          f32 scratch     h carry across chunks
    buf_ref    : (Tq, Bb, H_p)      f32 scratch     merged U(x)/hidden buffer:
                 slot t holds U(x)[t] until step t consumes it, then h_t.
    """
    ci = pl.program_id(1)                       # seq-chunk index ("arbitrary")
    Tq, Bb, Dip = x_ref.shape
    Hp = wT_ref.shape[0]
    Dop = c_wT_ref.shape[1]

    # Reset the hidden-state carry at the start of every batch block's sequence.
    @pl.when(ci == 0)
    def _():
        h_ref[...] = jnp.zeros_like(h_ref)

    wT = wT_ref[...]                            # loaded once per chunk

    # ---- Hoisted input projection: ONE off-serial-chain matmul per chunk ----
    x2d = x_ref[...].reshape(Tq * Bb, Dip).astype(u_wT_ref.dtype)
    xp = (jnp.dot(x2d, u_wT_ref[...], preferred_element_type=jnp.float32)
          + u_b_ref[...])
    buf_ref[...] = xp.reshape(Tq, Bb, Hp)

    def act(z):
        if activation == "linear":
            return z
        if activation == "tanh":
            return jnp.tanh(z)                  # EUP
        if activation == "hardtanh":
            return jnp.clip(z, -1.0, 1.0)       # VPU (keeps v5e's single EUP free)
        raise ValueError(activation)

    # ---- Serial recurrence: only h @ W^T remains on the critical path -------
    # TODO(synk): weight-stationary MXU drive (matmul_push_rhs once per chunk,
    # matmul_acc_lhs/matmul_pop per step) would avoid re-pushing W^T each step.
    def step(t, h):
        wh = jnp.dot(h.astype(wT.dtype), wT, preferred_element_type=jnp.float32)
        # Padded time steps (t_global >= seq_len) are masked by scaling dt to
        # 0 so the carried state is exact: h + 0 == h in f32.
        step_scale = jnp.where(ci * chunk + t < seq_len, dt, 0.0)
        h_new = h + step_scale * act(buf_ref[t] - wh)
        buf_ref[t] = h_new                      # reuse the slot just consumed
        return h_new

    h = lax.fori_loop(0, Tq, step, h_ref[...], unroll=unroll)
    h_ref[...] = h                              # carry to the next chunk

    @pl.when(ci == pl.num_programs(1) - 1)
    def _():
        h_last_ref[...] = h                     # only the final chunk writes

    # ---- Batched output projection + one lane-dense store per chunk ---------
    hid2d = buf_ref[...].reshape(Tq * Bb, Hp).astype(c_wT_ref.dtype)
    out2d = (jnp.dot(hid2d, c_wT_ref[...], preferred_element_type=jnp.float32)
             + c_b_ref[...])
    out_ref[...] = out2d.reshape(Tq, Bb, Dop).astype(out_ref.dtype)


# ----------------------------------------------------------------------------
# Wrapper
# ----------------------------------------------------------------------------
def stable_rnn_forward(x, params, *, dt=0.1, activation="tanh",
                       chunk=None, batch_block=None,
                       offchain_dtype=jnp.bfloat16,
                       recurrent_dtype=jnp.float32,
                       out_dtype=None,
                       single_buffer_weights=True):
    """JAX/Pallas equivalent of StableRNN.forward(x, h=None).

    Args:
      x: (seq_len, batch, input_dim) float32.
      params: dict with 'U_w' (H, D_in), 'U_b' (H,), 'W_log' (H, H)
        [unconstrained], 'c_w' (D_out, H), 'c_b' (D_out,).
      offchain_dtype: operand dtype of the two matmuls OFF the serial
        recurrence (U(x) and c(.)). bf16 gives ~3x MXU throughput there with
        no error compounding; use jnp.float32 for bit-faithful semantics.
      recurrent_dtype: operand dtype of the on-critical-path h @ W^T matmul.
        Keep f32 unless accuracy is re-validated (error compounds over seq).
      out_dtype: HBM storage dtype of the output (None -> x.dtype).
    Returns:
      out:    (seq_len, batch, output_dim)
      h_last: (1, 1, batch, hid_dim)  -- mirrors h_next.unsqueeze(1) in torch.
    """
    if activation not in ("linear", "tanh", "hardtanh"):
        raise ValueError(activation)
    seq, B, D_in = x.shape
    H = params["U_w"].shape[0]
    D_out = params["c_w"].shape[0]
    out_dtype = jnp.dtype(x.dtype if out_dtype is None else out_dtype)

    # Parametrization glue: effective recurrent weight = matrix_exp(W_log).
    w_eff = jax.scipy.linalg.expm(params["W_log"].astype(jnp.float32))

    # ---- Lane/sublane-aligned, zero-padded shapes ----------------------------
    H_p = _round_up(H, 128)
    D_in_p = _round_up(D_in, 128)
    D_out_p = _round_up(D_out, 128)

    # Batch tile: as large as the batch allows (fills MXU LHS rows of the
    # serial (Bb,H)@(H,H) matmul -- the #1 throughput lever), capped at 128,
    # kept to >= 2 blocks when possible so v7x's second TensorCore has work.
    if batch_block is None:
        batch_block = min(_round_up(B, 8), 128)
        if _round_up(B, batch_block) // batch_block < 2 and B >= 16:
            batch_block = max(8, _round_up(batch_block // 2, 8))
    batch_block = max(8, _round_up(int(batch_block), 8))   # f32 sublane multiple
    B_p = _round_up(B, batch_block)
    n_batch = B_p // batch_block

    # Generation-aware VMEM budget (v5e/v6e: 128 MiB, v7x: 64 MiB).
    try:
        vmem_cap = int(getattr(pltpu.get_tpu_info(), "vmem_capacity_bytes",
                               64 * 1024 * 1024))
    except Exception:
        vmem_cap = 64 * 1024 * 1024
    vmem_budget = int(0.85 * vmem_cap)

    itm_off = jnp.dtype(offchain_dtype).itemsize
    itm_rec = jnp.dtype(recurrent_dtype).itemsize
    itm_out = out_dtype.itemsize

    def footprint(c, bb, w_bufs=2):
        return (2 * c * bb * D_in_p * itm_off            # x tiles (double buf)
                + 2 * c * bb * D_out_p * itm_out         # out tiles (double buf)
                + 2 * bb * H_p * 4                       # h_last tile
                + w_bufs * (D_in_p * H_p * itm_off + H_p * 4
                            + H_p * H_p * itm_rec
                            + H_p * D_out_p * itm_off + D_out_p * 4)
                + bb * H_p * 4                           # h carry scratch
                + c * bb * H_p * 4)                      # merged U(x)/hidden buf

    # Sequence chunk: long enough to amortize the ~0.35us per-grid-step
    # overhead and feed the batched projections (M = chunk*Bb); auto-shrunk if
    # the VMEM working set would not fit this generation.
    if chunk is None:
        chunk = max(1, min(64, seq))
    chunk = max(1, int(chunk))
    while footprint(chunk, batch_block) > vmem_budget and chunk > 8:
        chunk = max(8, chunk // 2)
    seq_p = _round_up(seq, chunk)
    n_chunks = seq_p // chunk
    unroll = max(1, min(8, chunk))               # partial unroll (LLO visibility)

    def pad2(a, s0, s1, dtype):
        a = a.astype(jnp.float32)
        return jnp.pad(a, ((0, s0 - a.shape[0]),
                           (0, s1 - a.shape[1]))).astype(dtype)

    u_wT = pad2(params["U_w"].T, D_in_p, H_p, offchain_dtype)      # (D_in_p,H_p)
    u_b = pad2(params["U_b"].reshape(1, H), 1, H_p, jnp.float32)   # (1,H_p)
    wT = pad2(w_eff.T, H_p, H_p, recurrent_dtype)                  # (H_p,H_p)
    c_wT = pad2(params["c_w"].T, H_p, D_out_p, offchain_dtype)     # (H_p,D_out_p)
    c_b = pad2(params["c_b"].reshape(1, D_out), 1, D_out_p, jnp.float32)
    x_p = jnp.pad(x.astype(jnp.float32),
                  ((0, seq_p - seq), (0, B_p - B), (0, D_in_p - D_in))
                  ).astype(offchain_dtype)
    # NOTE: padded batch rows are all-zero but still evolve a hidden state
    # driven by U_b; they are sliced off below -- never read those rows.

    vmem_limit = int(min(max(int(1.25 * footprint(chunk, batch_block)),
                             16 * 1024 * 1024), vmem_budget))

    flops = 2 * seq_p * B_p * (D_in_p * H_p + H_p * H_p + H_p * D_out_p)
    transcendentals = seq_p * B_p * H_p if activation == "tanh" else 0
    bytes_accessed = (seq_p * B_p * D_in_p * itm_off
                      + seq_p * B_p * D_out_p * itm_out
                      + B_p * H_p * 4
                      + D_in_p * H_p * itm_off + H_p * H_p * itm_rec
                      + H_p * D_out_p * itm_off + (H_p + D_out_p) * 4)
    cost = pl.CostEstimate(flops=int(flops),
                           transcendentals=int(transcendentals),
                           bytes_accessed=int(bytes_accessed))

    kernel = functools.partial(
        _stablernn_kernel, dt=float(dt), activation=activation,
        seq_len=seq, chunk=chunk, unroll=unroll)

    def _call(use_single_buffer):
        def w_spec(shape):
            idx = lambda b, i: (0,) * len(shape)
            if use_single_buffer:
                # Loop-invariant weights need no re-DMA: a single VMEM buffer
                # (instead of the default double buffer) halves their
                # residency -- matters on v7x's 64 MiB VMEM at large H.
                return pl.BlockSpec(shape, idx, pipeline_mode=pl.Buffered(1))
            return pl.BlockSpec(shape, idx)

        return pl.pallas_call(
            kernel,
            out_shape=(
                jax.ShapeDtypeStruct((seq_p, B_p, D_out_p), out_dtype),
                jax.ShapeDtypeStruct((B_p, H_p), jnp.float32),
            ),
            grid_spec=pltpu.PrefetchScalarGridSpec(
                num_scalar_prefetch=0,
                grid=(n_batch, n_chunks),
                in_specs=[
                    pl.BlockSpec((chunk, batch_block, D_in_p),
                                 lambda b, i: (i, b, 0)),
                    w_spec((D_in_p, H_p)),
                    w_spec((1, H_p)),
                    w_spec((H_p, H_p)),
                    w_spec((H_p, D_out_p)),
                    w_spec((1, D_out_p)),
                ],
                out_specs=(
                    pl.BlockSpec((chunk, batch_block, D_out_p),
                                 lambda b, i: (i, b, 0)),
                    pl.BlockSpec((batch_block, H_p), lambda b, i: (b, 0)),
                ),
                scratch_shapes=[
                    pltpu.VMEM((batch_block, H_p), jnp.float32),         # h carry
                    pltpu.VMEM((chunk, batch_block, H_p), jnp.float32),  # xp/hid
                ],
            ),
            compiler_params=pltpu.CompilerParams(
                dimension_semantics=("parallel", "arbitrary"),
                vmem_limit_bytes=vmem_limit,
            ),
            cost_estimate=cost,
        )(x_p, u_wT, u_b, wT, c_wT, c_b)

    if single_buffer_weights:
        try:
            out_p, h_last_p = _call(True)
        except Exception:
            # pipeline_mode / Buffered(1) not supported on this jax version:
            # fall back to default double-buffered weights (correctness first).
            out_p, h_last_p = _call(False)
    else:
        out_p, h_last_p = _call(False)

    out = out_p[:seq, :B, :D_out]
    # torch: h_next has shape (1, B, H); forward returns h_next.unsqueeze(1).
    h_last = h_last_p[:B, :H].reshape(1, 1, B, H)
    return out, h_last


# ----------------------------------------------------------------------------
# Pure-JAX reference (mirrors the PyTorch forward exactly) for verification.
# ----------------------------------------------------------------------------
def stable_rnn_reference(x, params, *, dt=0.1, activation="tanh"):
    seq, B, D_in = x.shape
    H = params["U_w"].shape[0]
    w_eff = jax.scipy.linalg.expm(params["W_log"].astype(jnp.float32))
    hi = lax.Precision.HIGHEST

    def act(z):
        if activation == "linear":
            return z
        if activation == "tanh":
            return jnp.tanh(z)
        return jnp.clip(z, -1.0, 1.0)

    xp = jnp.einsum("sbd,hd->sbh", x, params["U_w"], precision=hi) + params["U_b"]
    h = jnp.zeros((B, H), dtype=jnp.float32)
    outs = []
    for t in range(seq):
        h = h + dt * act(xp[t] - jnp.dot(h, w_eff.T, precision=hi))
        outs.append(h)
    hid = jnp.stack(outs, axis=0)  # (seq, B, H)
    out = jnp.einsum("sbh,oh->sbo", hid, params["c_w"], precision=hi) + params["c_b"]
    return out, h.reshape(1, 1, B, H)


# ----------------------------------------------------------------------------
# Main
# ----------------------------------------------------------------------------
if __name__ == "__main__":
    # Small shapes; seq=9 with chunk=4 exercises both the cross-chunk h carry
    # and the padded-timestep masking path.
    seq_len, batch, input_dim, hid_dim, output_dim = 9, 2, 16, 32, 8
    dt = 0.1
    activation = "tanh"

    key = jax.random.PRNGKey(0)
    k_x, k_uw, k_ub, k_w, k_cw, k_cb = jax.random.split(key, 6)

    u_bound = input_dim ** -0.5
    c_bound = hid_dim ** -0.5
    params = {
        "U_w": jax.random.uniform(k_uw, (hid_dim, input_dim), jnp.float32,
                                  -u_bound, u_bound),
        "U_b": jax.random.uniform(k_ub, (hid_dim,), jnp.float32,
                                  -u_bound, u_bound),
        # Unconstrained parameter; effective recurrent weight = expm(W_log).
        "W_log": 0.1 * jax.random.normal(k_w, (hid_dim, hid_dim), jnp.float32),
        "c_w": jax.random.uniform(k_cw, (output_dim, hid_dim), jnp.float32,
                                  -c_bound, c_bound),
        "c_b": jax.random.uniform(k_cb, (output_dim,), jnp.float32,
                                  -c_bound, c_bound),
    }
    x = jax.random.normal(k_x, (seq_len, batch, input_dim), jnp.float32)

    out_ref, h_ref = stable_rnn_reference(x, params, dt=dt, activation=activation)

    # 1) f32 everywhere: checks exact forward semantics (tolerance covers MXU
    #    multi-pass f32 rounding and EUP tanh approximation).
    out32, h32 = stable_rnn_forward(x, params, dt=dt, activation=activation,
                                    chunk=4, offchain_dtype=jnp.float32)
    jax.block_until_ready((out32, h32))
    assert out32.shape == (seq_len, batch, output_dim)
    assert h32.shape == (1, 1, batch, hid_dim)
    assert jnp.allclose(out32, out_ref, atol=2e-3, rtol=2e-3)
    assert jnp.allclose(h32, h_ref, atol=2e-3, rtol=2e-3)

    # 2) Default fast path: bf16 operands on the two off-chain matmuls
    #    (U(x) and c(.)); recurrence stays f32, so only quantization noise.
    out_fast, h_fast = stable_rnn_forward(x, params, dt=dt,
                                          activation=activation, chunk=4)
    jax.block_until_ready((out_fast, h_fast))
    assert jnp.allclose(out_fast, out_ref, atol=5e-2, rtol=5e-2)
    assert jnp.allclose(h_fast, h_ref, atol=5e-2, rtol=5e-2)

    print("KERNEL_OK")
</pallas_src>

<mosaic_0001>
module attributes {stable_mosaic.version = 11 : i64} {
  func.func @_stablernn_kernel(%arg0: i32, %arg1: i32, %arg2: memref<4x8x128xf32, #tpu.memory_space<vmem>>, %arg3: memref<128x128xf32, #tpu.memory_space<vmem>>, %arg4: memref<1x128xf32, #tpu.memory_space<vmem>>, %arg5: memref<128x128xf32, #tpu.memory_space<vmem>>, %arg6: memref<128x128xf32, #tpu.memory_space<vmem>>, %arg7: memref<1x128xf32, #tpu.memory_space<vmem>>, %arg8: memref<4x8x128xf32, #tpu.memory_space<vmem>>, %arg9: memref<8x128xf32, #tpu.memory_space<vmem>>, %arg10: memref<8x128xf32, #tpu.memory_space<vmem>>, %arg11: memref<4x8x128xf32, #tpu.memory_space<vmem>>) attributes {dimension_semantics = [#tpu.dimension_semantics<parallel>, #tpu.dimension_semantics<arbitrary>], iteration_bounds = array<i64: 1, 3>, scalar_prefetch = 0 : i64, scratch_operands = 2 : i64, tpu.core_type = #tpu.core_type<tc>, window_params = [{transform_indices = @transform_0, window_bounds = array<i64: 4, 8, 128>}, {pipeline_mode = #tpu.pipeline_mode<synchronous>, transform_indices = @transform_1, window_bounds = array<i64: 128, 128>}, {pipeline_mode = #tpu.pipeline_mode<synchronous>, transform_indices = @transform_2, window_bounds = array<i64: 1, 128>}, {pipeline_mode = #tpu.pipeline_mode<synchronous>, transform_indices = @transform_3, window_bounds = array<i64: 128, 128>}, {pipeline_mode = #tpu.pipeline_mode<synchronous>, transform_indices = @transform_4, window_bounds = array<i64: 128, 128>}, {pipeline_mode = #tpu.pipeline_mode<synchronous>, transform_indices = @transform_5, window_bounds = array<i64: 1, 128>}, {transform_indices = @transform_6, window_bounds = array<i64: 4, 8, 128>}, {transform_indices = @transform_7, window_bounds = array<i64: 8, 128>}]} {
    %c0_i32 = arith.constant 0 : i32
    %0 = arith.cmpi eq, %arg1, %c0_i32 : i32
    %1 = arith.extui %0 : i1 to i32
    %c0_i32_0 = arith.constant 0 : i32
    %2 = arith.cmpi ne, %1, %c0_i32_0 : i32
    scf.if %2 {
      %cst_65 = arith.constant 0.000000e+00 : f32
      %95 = vector.broadcast %cst_65 : f32 to vector<8x128xf32>
      %c0_66 = arith.constant 0 : index
      %c0_67 = arith.constant 0 : index
      %96 = vector.load %arg10[%c0_66, %c0_67] : memref<8x128xf32, #tpu.memory_space<vmem>>, vector<8x128xf32>
      tpu.vector_store %arg10[%c0_66, %c0_67], %95 {strides = array<i32>} : memref<8x128xf32, #tpu.memory_space<vmem>>, vector<8x128xf32>,
    } else {
    }
    %c0 = arith.constant 0 : index
    %c0_1 = arith.constant 0 : index
    %3 = vector.load %arg5[%c0, %c0_1] : memref<128x128xf32, #tpu.memory_space<vmem>>, vector<128x128xf32>
    %c0_2 = arith.constant 0 : index
    %c0_3 = arith.constant 0 : index
    %c0_4 = arith.constant 0 : index
    %4 = vector.load %arg2[%c0_2, %c0_3, %c0_4] : memref<4x8x128xf32, #tpu.memory_space<vmem>>, vector<4x8x128xf32>
    %5 = vector.shape_cast %4 : vector<4x8x128xf32> to vector<32x128xf32>
    %c0_5 = arith.constant 0 : index
    %c0_6 = arith.constant 0 : index
    %6 = vector.load %arg3[%c0_5, %c0_6] : memref<128x128xf32, #tpu.memory_space<vmem>>, vector<128x128xf32>
    %cst = arith.constant dense<0.000000e+00> : vector<32x128xf32>
    %7 = tpu.matmul %5, %6, %cst {dimension_numbers = #tpu.dot_dimension_numbers<[1], [0], [0], [1], [0, 0, 1, 1], [], []>} : vector<32x128xf32>, vector<128x128xf32>, vector<32x128xf32> -> vector<32x128xf32>
    %c0_7 = arith.constant 0 : index
    %c0_8 = arith.constant 0 : index
    %8 = vector.load %arg4[%c0_7, %c0_8] : memref<1x128xf32, #tpu.memory_space<vmem>>, vector<1x128xf32>
    %9 = vector.broadcast %8 : vector<1x128xf32> to vector<32x128xf32>
    %10 = arith.addf %7, %9 : vector<32x128xf32>
    %11 = vector.shape_cast %10 : vector<32x128xf32> to vector<4x8x128xf32>
    %c0_9 = arith.constant 0 : index
    %c0_10 = arith.constant 0 : index
    %c0_11 = arith.constant 0 : index
    %12 = vector.load %arg11[%c0_9, %c0_10, %c0_11] : memref<4x8x128xf32, #tpu.memory_space<vmem>>, vector<4x8x128xf32>
    tpu.vector_store %arg11[%c0_9, %c0_10, %c0_11], %11 {strides = array<i32>} : memref<4x8x128xf32, #tpu.memory_space<vmem>>, vector<4x8x128xf32>,
    %c0_12 = arith.constant 0 : index
    %c0_13 = arith.constant 0 : index
    %13 = vector.load %arg10[%c0_12, %c0_13] : memref<8x128xf32, #tpu.memory_space<vmem>>, vector<8x128xf32>
    %c0_i32_14 = arith.constant 0 : i32
    %cst_15 = arith.constant dense<0.000000e+00> : vector<8x128xf32>
    %14 = tpu.matmul %13, %3, %cst_15 {dimension_numbers = #tpu.dot_dimension_numbers<[1], [0], [0], [1], [0, 0, 1, 1], [], []>} : vector<8x128xf32>, vector<128x128xf32>, vector<8x128xf32> -> vector<8x128xf32>
    %c4_i32 = arith.constant 4 : i32
    %15 = arith.muli %arg1, %c4_i32 : i32
    %16 = arith.addi %15, %c0_i32_14 : i32
    %c9_i32 = arith.constant 9 : i32
    %17 = arith.cmpi slt, %16, %c9_i32 : i32
    %cst_16 = arith.constant 1.000000e-01 : f32
    %cst_17 = arith.constant 0.000000e+00 : f32
    %18 = arith.select %17, %cst_16, %cst_17 : f32
    %19 = arith.index_cast %c0_i32_14 : i32 to index
    %c0_18 = arith.constant 0 : index
    %c0_19 = arith.constant 0 : index
    %20 = vector.load %arg11[%19, %c0_18, %c0_19] : memref<4x8x128xf32, #tpu.memory_space<vmem>>, vector<1x8x128xf32>
    %21 = vector.shape_cast %20 : vector<1x8x128xf32> to vector<8x128xf32>
    %22 = arith.subf %21, %14 : vector<8x128xf32>
    %23 = math.tanh %22 : vector<8x128xf32>
    %24 = vector.broadcast %18 : f32 to vector<8x128xf32>
    %25 = arith.mulf %24, %23 : vector<8x128xf32>
    %26 = arith.addf %13, %25 : vector<8x128xf32>
    %27 = arith.index_cast %c0_i32_14 : i32 to index
    %c0_20 = arith.constant 0 : index
    %c0_21 = arith.constant 0 : index
    %28 = vector.load %arg11[%27, %c0_20, %c0_21] : memref<4x8x128xf32, #tpu.memory_space<vmem>>, vector<1x8x128xf32>
    %29 = vector.shape_cast %28 : vector<1x8x128xf32> to vector<8x128xf32>
    %30 = vector.shape_cast %26 : vector<8x128xf32> to vector<1x8x128xf32>
    tpu.vector_store %arg11[%27, %c0_20, %c0_21], %30 {strides = array<i32>} : memref<4x8x128xf32, #tpu.memory_space<vmem>>, vector<1x8x128xf32>,
    %c1_i32 = arith.constant 1 : i32
    %cst_22 = arith.constant dense<0.000000e+00> : vector<8x128xf32>
    %31 = tpu.matmul %26, %3, %cst_22 {dimension_numbers = #tpu.dot_dimension_numbers<[1], [0], [0], [1], [0, 0, 1, 1], [], []>} : vector<8x128xf32>, vector<128x128xf32>, vector<8x128xf32> -> vector<8x128xf32>
    %c4_i32_23 = arith.constant 4 : i32
    %32 = arith.muli %arg1, %c4_i32_23 : i32
    %33 = arith.addi %32, %c1_i32 : i32
    %c9_i32_24 = arith.constant 9 : i32
    %34 = arith.cmpi slt, %33, %c9_i32_24 : i32
    %cst_25 = arith.constant 1.000000e-01 : f32
    %cst_26 = arith.constant 0.000000e+00 : f32
    %35 = arith.select %34, %cst_25, %cst_26 : f32
    %36 = arith.index_cast %c1_i32 : i32 to index
    %c0_27 = arith.constant 0 : index
    %c0_28 = arith.constant 0 : index
    %37 = vector.load %arg11[%36, %c0_27, %c0_28] : memref<4x8x128xf32, #tpu.memory_space<vmem>>, vector<1x8x128xf32>
    %38 = vector.shape_cast %37 : vector<1x8x128xf32> to vector<8x128xf32>
    %39 = arith.subf %38, %31 : vector<8x128xf32>
    %40 = math.tanh %39 : vector<8x128xf32>
    %41 = vector.broadcast %35 : f32 to vector<8x128xf32>
    %42 = arith.mulf %41, %40 : vector<8x128xf32>
    %43 = arith.addf %26, %42 : vector<8x128xf32>
    %44 = arith.index_cast %c1_i32 : i32 to index
    %c0_29 = arith.constant 0 : index
    %c0_30 = arith.constant 0 : index
    %45 = vector.load %arg11[%44, %c0_29, %c0_30] : memref<4x8x128xf32, #tpu.memory_space<vmem>>, vector<1x8x128xf32>
    %46 = vector.shape_cast %45 : vector<1x8x128xf32> to vector<8x128xf32>
    %47 = vector.shape_cast %43 : vector<8x128xf32> to vector<1x8x128xf32>
    tpu.vector_store %arg11[%44, %c0_29, %c0_30], %47 {strides = array<i32>} : memref<4x8x128xf32, #tpu.memory_space<vmem>>, vector<1x8x128xf32>,
    %c2_i32 = arith.constant 2 : i32
    %cst_31 = arith.constant dense<0.000000e+00> : vector<8x128xf32>
    %48 = tpu.matmul %43, %3, %cst_31 {dimension_numbers = #tpu.dot_dimension_numbers<[1], [0], [0], [1], [0, 0, 1, 1], [], []>} : vector<8x128xf32>, vector<128x128xf32>, vector<8x128xf32> -> vector<8x128xf32>
    %c4_i32_32 = arith.constant 4 : i32
    %49 = arith.muli %arg1, %c4_i32_32 : i32
    %50 = arith.addi %49, %c2_i32 : i32
    %c9_i32_33 = arith.constant 9 : i32
    %51 = arith.cmpi slt, %50, %c9_i32_33 : i32
    %cst_34 = arith.constant 1.000000e-01 : f32
    %cst_35 = arith.constant 0.000000e+00 : f32
    %52 = arith.select %51, %cst_34, %cst_35 : f32
    %53 = arith.index_cast %c2_i32 : i32 to index
    %c0_36 = arith.constant 0 : index
    %c0_37 = arith.constant 0 : index
    %54 = vector.load %arg11[%53, %c0_36, %c0_37] : memref<4x8x128xf32, #tpu.memory_space<vmem>>, vector<1x8x128xf32>
    %55 = vector.shape_cast %54 : vector<1x8x128xf32> to vector<8x128xf32>
    %56 = arith.subf %55, %48 : vector<8x128xf32>
    %57 = math.tanh %56 : vector<8x128xf32>
    %58 = vector.broadcast %52 : f32 to vector<8x128xf32>
    %59 = arith.mulf %58, %57 : vector<8x128xf32>
    %60 = arith.addf %43, %59 : vector<8x128xf32>
    %61 = arith.index_cast %c2_i32 : i32 to index
    %c0_38 = arith.constant 0 : index
    %c0_39 = arith.constant 0 : index
    %62 = vector.load %arg11[%61, %c0_38, %c0_39] : memref<4x8x128xf32, #tpu.memory_space<vmem>>, vector<1x8x128xf32>
    %63 = vector.shape_cast %62 : vector<1x8x128xf32> to vector<8x128xf32>
    %64 = vector.shape_cast %60 : vector<8x128xf32> to vector<1x8x128xf32>
    tpu.vector_store %arg11[%61, %c0_38, %c0_39], %64 {strides = array<i32>} : memref<4x8x128xf32, #tpu.memory_space<vmem>>, vector<1x8x128xf32>,
    %c3_i32 = arith.constant 3 : i32
    %cst_40 = arith.constant dense<0.000000e+00> : vector<8x128xf32>
    %65 = tpu.matmul %60, %3, %cst_40 {dimension_numbers = #tpu.dot_dimension_numbers<[1], [0], [0], [1], [0, 0, 1, 1], [], []>} : vector<8x128xf32>, vector<128x128xf32>, vector<8x128xf32> -> vector<8x128xf32>
    %c4_i32_41 = arith.constant 4 : i32
    %66 = arith.muli %arg1, %c4_i32_41 : i32
    %67 = arith.addi %66, %c3_i32 : i32
    %c9_i32_42 = arith.constant 9 : i32
    %68 = arith.cmpi slt, %67, %c9_i32_42 : i32
    %cst_43 = arith.constant 1.000000e-01 : f32
    %cst_44 = arith.constant 0.000000e+00 : f32
    %69 = arith.select %68, %cst_43, %cst_44 : f32
    %70 = arith.index_cast %c3_i32 : i32 to index
    %c0_45 = arith.constant 0 : index
    %c0_46 = arith.constant 0 : index
    %71 = vector.load %arg11[%70, %c0_45, %c0_46] : memref<4x8x128xf32, #tpu.memory_space<vmem>>, vector<1x8x128xf32>
    %72 = vector.shape_cast %71 : vector<1x8x128xf32> to vector<8x128xf32>
    %73 = arith.subf %72, %65 : vector<8x128xf32>
    %74 = math.tanh %73 : vector<8x128xf32>
    %75 = vector.broadcast %69 : f32 to vector<8x128xf32>
    %76 = arith.mulf %75, %74 : vector<8x128xf32>
    %77 = arith.addf %60, %76 : vector<8x128xf32>
    %78 = arith.index_cast %c3_i32 : i32 to index
    %c0_47 = arith.constant 0 : index
    %c0_48 = arith.constant 0 : index
    %79 = vector.load %arg11[%78, %c0_47, %c0_48] : memref<4x8x128xf32, #tpu.memory_space<vmem>>, vector<1x8x128xf32>
    %80 = vector.shape_cast %79 : vector<1x8x128xf32> to vector<8x128xf32>
    %81 = vector.shape_cast %77 : vector<8x128xf32> to vector<1x8x128xf32>
    tpu.vector_store %arg11[%78, %c0_47, %c0_48], %81 {strides = array<i32>} : memref<4x8x128xf32, #tpu.memory_space<vmem>>, vector<1x8x128xf32>,
    %c4_i32_49 = arith.constant 4 : i32
    %c0_50 = arith.constant 0 : index
    %c0_51 = arith.constant 0 : index
    %82 = vector.load %arg10[%c0_50, %c0_51] : memref<8x128xf32, #tpu.memory_space<vmem>>, vector<8x128xf32>
    tpu.vector_store %arg10[%c0_50, %c0_51], %77 {strides = array<i32>} : memref<8x128xf32, #tpu.memory_space<vmem>>, vector<8x128xf32>,
    %c2_i32_52 = arith.constant 2 : i32
    %83 = arith.cmpi eq, %arg1, %c2_i32_52 : i32
    %84 = arith.extui %83 : i1 to i32
    %c0_i32_53 = arith.constant 0 : i32
    %85 = arith.cmpi ne, %84, %c0_i32_53 : i32
    scf.if %85 {
      %c0_65 = arith.constant 0 : index
      %c0_66 = arith.constant 0 : index
      %95 = vector.load %arg9[%c0_65, %c0_66] : memref<8x128xf32, #tpu.memory_space<vmem>>, vector<8x128xf32>
      tpu.vector_store %arg9[%c0_65, %c0_66], %77 {strides = array<i32>} : memref<8x128xf32, #tpu.memory_space<vmem>>, vector<8x128xf32>,
    } else {
    }
    %c0_54 = arith.constant 0 : index
    %c0_55 = arith.constant 0 : index
    %c0_56 = arith.constant 0 : index
    %86 = vector.load %arg11[%c0_54, %c0_55, %c0_56] : memref<4x8x128xf32, #tpu.memory_space<vmem>>, vector<4x8x128xf32>
    %87 = vector.shape_cast %86 : vector<4x8x128xf32> to vector<32x128xf32>
    %c0_57 = arith.constant 0 : index
    %c0_58 = arith.constant 0 : index
    %88 = vector.load %arg6[%c0_57, %c0_58] : memref<128x128xf32, #tpu.memory_space<vmem>>, vector<128x128xf32>
    %cst_59 = arith.constant dense<0.000000e+00> : vector<32x128xf32>
    %89 = tpu.matmul %87, %88, %cst_59 {dimension_numbers = #tpu.dot_dimension_numbers<[1], [0], [0], [1], [0, 0, 1, 1], [], []>} : vector<32x128xf32>, vector<128x128xf32>, vector<32x128xf32> -> vector<32x128xf32>
    %c0_60 = arith.constant 0 : index
    %c0_61 = arith.constant 0 : index
    %90 = vector.load %arg7[%c0_60, %c0_61] : memref<1x128xf32, #tpu.memory_space<vmem>>, vector<1x128xf32>
    %91 = vector.broadcast %90 : vector<1x128xf32> to vector<32x128xf32>
    %92 = arith.addf %89, %91 : vector<32x128xf32>
    %93 = vector.shape_cast %92 : vector<32x128xf32> to vector<4x8x128xf32>
    %c0_62 = arith.constant 0 : index
    %c0_63 = arith.constant 0 : index
    %c0_64 = arith.constant 0 : index
    %94 = vector.load %arg8[%c0_62, %c0_63, %c0_64] : memref<4x8x128xf32, #tpu.memory_space<vmem>>, vector<4x8x128xf32>
    tpu.vector_store %arg8[%c0_62, %c0_63, %c0_64], %93 {strides = array<i32>} : memref<4x8x128xf32, #tpu.memory_space<vmem>>, vector<4x8x128xf32>,
    return
  }
  func.func @transform_0(%arg0: i32, %arg1: i32) -> (i32, i32, i32) {
    %c0_i32 = arith.constant 0 : i32
    %c0_i32_0 = arith.constant 0 : i32
    return %arg1, %arg0, %c0_i32 : i32, i32, i32
  }
  func.func @transform_1(%arg0: i32, %arg1: i32) -> (i32, i32) {
    %c0_i32 = arith.constant 0 : i32
    %c0_i32_0 = arith.constant 0 : i32
    %c0_i32_1 = arith.constant 0 : i32
    return %c0_i32, %c0_i32_0 : i32, i32
  }
  func.func @transform_2(%arg0: i32, %arg1: i32) -> (i32, i32) {
    %c0_i32 = arith.constant 0 : i32
    %c0_i32_0 = arith.constant 0 : i32
    %c0_i32_1 = arith.constant 0 : i32
    return %c0_i32, %c0_i32_0 : i32, i32
  }
  func.func @transform_3(%arg0: i32, %arg1: i32) -> (i32, i32) {
    %c0_i32 = arith.constant 0 : i32
    %c0_i32_0 = arith.constant 0 : i32
    %c0_i32_1 = arith.constant 0 : i32
    return %c0_i32, %c0_i32_0 : i32, i32
  }
  func.func @transform_4(%arg0: i32, %arg1: i32) -> (i32, i32) {
    %c0_i32 = arith.constant 0 : i32
    %c0_i32_0 = arith.constant 0 : i32
    %c0_i32_1 = arith.constant 0 : i32
    return %c0_i32, %c0_i32_0 : i32, i32
  }
  func.func @transform_5(%arg0: i32, %arg1: i32) -> (i32, i32) {
    %c0_i32 = arith.constant 0 : i32
    %c0_i32_0 = arith.constant 0 : i32
    %c0_i32_1 = arith.constant 0 : i32
    return %c0_i32, %c0_i32_0 : i32, i32
  }
  func.func @transform_6(%arg0: i32, %arg1: i32) -> (i32, i32, i32) {
    %c0_i32 = arith.constant 0 : i32
    %c0_i32_0 = arith.constant 0 : i32
    return %arg1, %arg0, %c0_i32 : i32, i32, i32
  }
  func.func @transform_7(%arg0: i32, %arg1: i32) -> (i32, i32) {
    %c0_i32 = arith.constant 0 : i32
    %c0_i32_0 = arith.constant 0 : i32
    return %arg0, %c0_i32 : i32, i32
  }
}

module attributes {stable_mosaic.version = 11 : i64} {
  func.func @_stablernn_kernel(%arg0: i32, %arg1: i32, %arg2: memref<4x8x128xf32, #tpu.memory_space<vmem>>, %arg3: memref<128x128xf32, #tpu.memory_space<vmem>>, %arg4: memref<1x128xf32, #tpu.memory_space<vmem>>, %arg5: memref<128x128xf32, #tpu.memory_space<vmem>>, %arg6: memref<128x128xf32, #tpu.memory_space<vmem>>, %arg7: memref<1x128xf32, #tpu.memory_space<vmem>>, %arg8: memref<4x8x128xf32, #tpu.memory_space<vmem>>, %arg9: memref<8x128xf32, #tpu.memory_space<vmem>>, %arg10: memref<8x128xf32, #tpu.memory_space<vmem>>, %arg11: memref<4x8x128xf32, #tpu.memory_space<vmem>>) attributes {dimension_semantics = [#tpu.dimension_semantics<parallel>, #tpu.dimension_semantics<arbitrary>], iteration_bounds = array<i64: 1, 3>, scalar_prefetch = 0 : i64, scratch_operands = 2 : i64, tpu.core_type = #tpu.core_type<tc>, window_params = [{transform_indices = @transform_0, window_bounds = array<i64: 4, 8, 128>}, {pipeline_mode = #tpu.pipeline_mode<synchronous>, transform_indices = @transform_1, window_bounds = array<i64: 128, 128>}, {pipeline_mode = #tpu.pipeline_mode<synchronous>, transform_indices = @transform_2, window_bounds = array<i64: 1, 128>}, {pipeline_mode = #tpu.pipeline_mode<synchronous>, transform_indices = @transform_3, window_bounds = array<i64: 128, 128>}, {pipeline_mode = #tpu.pipeline_mode<synchronous>, transform_indices = @transform_4, window_bounds = array<i64: 128, 128>}, {pipeline_mode = #tpu.pipeline_mode<synchronous>, transform_indices = @transform_5, window_bounds = array<i64: 1, 128>}, {transform_indices = @transform_6, window_bounds = array<i64: 4, 8, 128>}, {transform_indices = @transform_7, window_bounds = array<i64: 8, 128>}]} {
    %c0_i32 = arith.constant 0 : i32
    %0 = arith.cmpi eq, %arg1, %c0_i32 : i32
    %1 = arith.extui %0 : i1 to i32
    %c0_i32_0 = arith.constant 0 : i32
    %2 = arith.cmpi ne, %1, %c0_i32_0 : i32
    scf.if %2 {
      %cst_65 = arith.constant 0.000000e+00 : f32
      %95 = vector.broadcast %cst_65 : f32 to vector<8x128xf32>
      %c0_66 = arith.constant 0 : index
      %c0_67 = arith.constant 0 : index
      %96 = vector.load %arg10[%c0_66, %c0_67] : memref<8x128xf32, #tpu.memory_space<vmem>>, vector<8x128xf32>
      tpu.vector_store %arg10[%c0_66, %c0_67], %95 {strides = array<i32>} : memref<8x128xf32, #tpu.memory_space<vmem>>, vector<8x128xf32>,
    } else {
    }
    %c0 = arith.constant 0 : index
    %c0_1 = arith.constant 0 : index
    %3 = vector.load %arg5[%c0, %c0_1] : memref<128x128xf32, #tpu.memory_space<vmem>>, vector<128x128xf32>
    %c0_2 = arith.constant 0 : index
    %c0_3 = arith.constant 0 : index
    %c0_4 = arith.constant 0 : index
    %4 = vector.load %arg2[%c0_2, %c0_3, %c0_4] : memref<4x8x128xf32, #tpu.memory_space<vmem>>, vector<4x8x128xf32>
    %5 = vector.shape_cast %4 : vector<4x8x128xf32> to vector<32x128xf32>
    %c0_5 = arith.constant 0 : index
    %c0_6 = arith.constant 0 : index
    %6 = vector.load %arg3[%c0_5, %c0_6] : memref<128x128xf32, #tpu.memory_space<vmem>>, vector<128x128xf32>
    %cst = arith.constant dense<0.000000e+00> : vector<32x128xf32>
    %7 = tpu.matmul %5, %6, %cst {dimension_numbers = #tpu.dot_dimension_numbers<[1], [0], [0], [1], [0, 0, 1, 1], [], []>} : vector<32x128xf32>, vector<128x128xf32>, vector<32x128xf32> -> vector<32x128xf32>
    %c0_7 = arith.constant 0 : index
    %c0_8 = arith.constant 0 : index
    %8 = vector.load %arg4[%c0_7, %c0_8] : memref<1x128xf32, #tpu.memory_space<vmem>>, vector<1x128xf32>
    %9 = vector.broadcast %8 : vector<1x128xf32> to vector<32x128xf32>
    %10 = arith.addf %7, %9 : vector<32x128xf32>
    %11 = vector.shape_cast %10 : vector<32x128xf32> to vector<4x8x128xf32>
    %c0_9 = arith.constant 0 : index
    %c0_10 = arith.constant 0 : index
    %c0_11 = arith.constant 0 : index
    %12 = vector.load %arg11[%c0_9, %c0_10, %c0_11] : memref<4x8x128xf32, #tpu.memory_space<vmem>>, vector<4x8x128xf32>
    tpu.vector_store %arg11[%c0_9, %c0_10, %c0_11], %11 {strides = array<i32>} : memref<4x8x128xf32, #tpu.memory_space<vmem>>, vector<4x8x128xf32>,
    %c0_12 = arith.constant 0 : index
    %c0_13 = arith.constant 0 : index
    %13 = vector.load %arg10[%c0_12, %c0_13] : memref<8x128xf32, #tpu.memory_space<vmem>>, vector<8x128xf32>
    %c0_i32_14 = arith.constant 0 : i32
    %cst_15 = arith.constant dense<0.000000e+00> : vector<8x128xf32>
    %14 = tpu.matmul %13, %3, %cst_15 {dimension_numbers = #tpu.dot_dimension_numbers<[1], [0], [0], [1], [0, 0, 1, 1], [], []>} : vector<8x128xf32>, vector<128x128xf32>, vector<8x128xf32> -> vector<8x128xf32>
    %c4_i32 = arith.constant 4 : i32
    %15 = arith.muli %arg1, %c4_i32 : i32
    %16 = arith.addi %15, %c0_i32_14 : i32
    %c9_i32 = arith.constant 9 : i32
    %17 = arith.cmpi slt, %16, %c9_i32 : i32
    %cst_16 = arith.constant 1.000000e-01 : f32
    %cst_17 = arith.constant 0.000000e+00 : f32
    %18 = arith.select %17, %cst_16, %cst_17 : f32
    %19 = arith.index_cast %c0_i32_14 : i32 to index
    %c0_18 = arith.constant 0 : index
    %c0_19 = arith.constant 0 : index
    %20 = vector.load %arg11[%19, %c0_18, %c0_19] : memref<4x8x128xf32, #tpu.memory_space<vmem>>, vector<1x8x128xf32>
    %21 = vector.shape_cast %20 : vector<1x8x128xf32> to vector<8x128xf32>
    %22 = arith.subf %21, %14 : vector<8x128xf32>
    %23 = math.tanh %22 : vector<8x128xf32>
    %24 = vector.broadcast %18 : f32 to vector<8x128xf32>
    %25 = arith.mulf %24, %23 : vector<8x128xf32>
    %26 = arith.addf %13, %25 : vector<8x128xf32>
    %27 = arith.index_cast %c0_i32_14 : i32 to index
    %c0_20 = arith.constant 0 : index
    %c0_21 = arith.constant 0 : index
    %28 = vector.load %arg11[%27, %c0_20, %c0_21] : memref<4x8x128xf32, #tpu.memory_space<vmem>>, vector<1x8x128xf32>
    %29 = vector.shape_cast %28 : vector<1x8x128xf32> to vector<8x128xf32>
    %30 = vector.shape_cast %26 : vector<8x128xf32> to vector<1x8x128xf32>
    tpu.vector_store %arg11[%27, %c0_20, %c0_21], %30 {strides = array<i32>} : memref<4x8x128xf32, #tpu.memory_space<vmem>>, vector<1x8x128xf32>,
    %c1_i32 = arith.constant 1 : i32
    %cst_22 = arith.constant dense<0.000000e+00> : vector<8x128xf32>
    %31 = tpu.matmul %26, %3, %cst_22 {dimension_numbers = #tpu.dot_dimension_numbers<[1], [0], [0], [1], [0, 0, 1, 1], [], []>} : vector<8x128xf32>, vector<128x128xf32>, vector<8x128xf32> -> vector<8x128xf32>
    %c4_i32_23 = arith.constant 4 : i32
    %32 = arith.muli %arg1, %c4_i32_23 : i32
    %33 = arith.addi %32, %c1_i32 : i32
    %c9_i32_24 = arith.constant 9 : i32
    %34 = arith.cmpi slt, %33, %c9_i32_24 : i32
    %cst_25 = arith.constant 1.000000e-01 : f32
    %cst_26 = arith.constant 0.000000e+00 : f32
    %35 = arith.select %34, %cst_25, %cst_26 : f32
    %36 = arith.index_cast %c1_i32 : i32 to index
    %c0_27 = arith.constant 0 : index
    %c0_28 = arith.constant 0 : index
    %37 = vector.load %arg11[%36, %c0_27, %c0_28] : memref<4x8x128xf32, #tpu.memory_space<vmem>>, vector<1x8x128xf32>
    %38 = vector.shape_cast %37 : vector<1x8x128xf32> to vector<8x128xf32>
    %39 = arith.subf %38, %31 : vector<8x128xf32>
    %40 = math.tanh %39 : vector<8x128xf32>
    %41 = vector.broadcast %35 : f32 to vector<8x128xf32>
    %42 = arith.mulf %41, %40 : vector<8x128xf32>
    %43 = arith.addf %26, %42 : vector<8x128xf32>
    %44 = arith.index_cast %c1_i32 : i32 to index
    %c0_29 = arith.constant 0 : index
    %c0_30 = arith.constant 0 : index
    %45 = vector.load %arg11[%44, %c0_29, %c0_30] : memref<4x8x128xf32, #tpu.memory_space<vmem>>, vector<1x8x128xf32>
    %46 = vector.shape_cast %45 : vector<1x8x128xf32> to vector<8x128xf32>
    %47 = vector.shape_cast %43 : vector<8x128xf32> to vector<1x8x128xf32>
    tpu.vector_store %arg11[%44, %c0_29, %c0_30], %47 {strides = array<i32>} : memref<4x8x128xf32, #tpu.memory_space<vmem>>, vector<1x8x128xf32>,
    %c2_i32 = arith.constant 2 : i32
    %cst_31 = arith.constant dense<0.000000e+00> : vector<8x128xf32>
    %48 = tpu.matmul %43, %3, %cst_31 {dimension_numbers = #tpu.dot_dimension_numbers<[1], [0], [0], [1], [0, 0, 1, 1], [], []>} : vector<8x128xf32>, vector<128x128xf32>, vector<8x128xf32> -> vector<8x128xf32>
    %c4_i32_32 = arith.constant 4 : i32
    %49 = arith.muli %arg1, %c4_i32_32 : i32
    %50 = arith.addi %49, %c2_i32 : i32
    %c9_i32_33 = arith.constant 9 : i32
    %51 = arith.cmpi slt, %50, %c9_i32_33 : i32
    %cst_34 = arith.constant 1.000000e-01 : f32
    %cst_35 = arith.constant 0.000000e+00 : f32
    %52 = arith.select %51, %cst_34, %cst_35 : f32
    %53 = arith.index_cast %c2_i32 : i32 to index
    %c0_36 = arith.constant 0 : index
    %c0_37 = arith.constant 0 : index
    %54 = vector.load %arg11[%53, %c0_36, %c0_37] : memref<4x8x128xf32, #tpu.memory_space<vmem>>, vector<1x8x128xf32>
    %55 = vector.shape_cast %54 : vector<1x8x128xf32> to vector<8x128xf32>
    %56 = arith.subf %55, %48 : vector<8x128xf32>
    %57 = math.tanh %56 : vector<8x128xf32>
    %58 = vector.broadcast %52 : f32 to vector<8x128xf32>
    %59 = arith.mulf %58, %57 : vector<8x128xf32>
    %60 = arith.addf %43, %59 : vector<8x128xf32>
    %61 = arith.index_cast %c2_i32 : i32 to index
    %c0_38 = arith.constant 0 : index
    %c0_39 = arith.constant 0 : index
    %62 = vector.load %arg11[%61, %c0_38, %c0_39] : memref<4x8x128xf32, #tpu.memory_space<vmem>>, vector<1x8x128xf32>
    %63 = vector.shape_cast %62 : vector<1x8x128xf32> to vector<8x128xf32>
    %64 = vector.shape_cast %60 : vector<8x128xf32> to vector<1x8x128xf32>
    tpu.vector_store %arg11[%61, %c0_38, %c0_39], %64 {strides = array<i32>} : memref<4x8x128xf32, #tpu.memory_space<vmem>>, vector<1x8x128xf32>,
    %c3_i32 = arith.constant 3 : i32
    %cst_40 = arith.constant dense<0.000000e+00> : vector<8x128xf32>
    %65 = tpu.matmul %60, %3, %cst_40 {dimension_numbers = #tpu.dot_dimension_numbers<[1], [0], [0], [1], [0, 0, 1, 1], [], []>} : vector<8x128xf32>, vector<128x128xf32>, vector<8x128xf32> -> vector<8x128xf32>
    %c4_i32_41 = arith.constant 4 : i32
    %66 = arith.muli %arg1, %c4_i32_41 : i32
    %67 = arith.addi %66, %c3_i32 : i32
    %c9_i32_42 = arith.constant 9 : i32
    %68 = arith.cmpi slt, %67, %c9_i32_42 : i32
    %cst_43 = arith.constant 1.000000e-01 : f32
    %cst_44 = arith.constant 0.000000e+00 : f32
    %69 = arith.select %68, %cst_43, %cst_44 : f32
    %70 = arith.index_cast %c3_i32 : i32 to index
    %c0_45 = arith.constant 0 : index
    %c0_46 = arith.constant 0 : index
    %71 = vector.load %arg11[%70, %c0_45, %c0_46] : memref<4x8x128xf32, #tpu.memory_space<vmem>>, vector<1x8x128xf32>
    %72 = vector.shape_cast %71 : vector<1x8x128xf32> to vector<8x128xf32>
    %73 = arith.subf %72, %65 : vector<8x128xf32>
    %74 = math.tanh %73 : vector<8x128xf32>
    %75 = vector.broadcast %69 : f32 to vector<8x128xf32>
    %76 = arith.mulf %75, %74 : vector<8x128xf32>
    %77 = arith.addf %60, %76 : vector<8x128xf32>
    %78 = arith.index_cast %c3_i32 : i32 to index
    %c0_47 = arith.constant 0 : index
    %c0_48 = arith.constant 0 : index
    %79 = vector.load %arg11[%78, %c0_47, %c0_48] : memref<4x8x128xf32, #tpu.memory_space<vmem>>, vector<1x8x128xf32>
    %80 = vector.shape_cast %79 : vector<1x8x128xf32> to vector<8x128xf32>
    %81 = vector.shape_cast %77 : vector<8x128xf32> to vector<1x8x128xf32>
    tpu.vector_store %arg11[%78, %c0_47, %c0_48], %81 {strides = array<i32>} : memref<4x8x128xf32, #tpu.memory_space<vmem>>, vector<1x8x128xf32>,
    %c4_i32_49 = arith.constant 4 : i32
    %c0_50 = arith.constant 0 : index
    %c0_51 = arith.constant 0 : index
    %82 = vector.load %arg10[%c0_50, %c0_51] : memref<8x128xf32, #tpu.memory_space<vmem>>, vector<8x128xf32>
    tpu.vector_store %arg10[%c0_50, %c0_51], %77 {strides = array<i32>} : memref<8x128xf32, #tpu.memory_space<vmem>>, vector<8x128xf32>,
    %c2_i32_52 = arith.constant 2 : i32
    %83 = arith.cmpi eq, %arg1, %c2_i32_52 : i32
    %84 = arith.extui %83 : i1 to i32
    %c0_i32_53 = arith.constant 0 : i32
    %85 = arith.cmpi ne, %84, %c0_i32_53 : i32
    scf.if %85 {
      %c0_65 = arith.constant 0 : index
      %c0_66 = arith.constant 0 : index
      %95 = vector.load %arg9[%c0_65, %c0_66] : memref<8x128xf32, #tpu.memory_space<vmem>>, vector<8x128xf32>
      tpu.vector_store %arg9[%c0_65, %c0_66], %77 {strides = array<i32>} : memref<8x128xf32, #tpu.memory_space<vmem>>, vector<8x128xf32>,
    } else {
    }
    %c0_54 = arith.constant 0 : index
    %c0_55 = arith.constant 0 : index
    %c0_56 = arith.constant 0 : index
    %86 = vector.load %arg11[%c0_54, %c0_55, %c0_56] : memref<4x8x128xf32, #tpu.memory_space<vmem>>, vector<4x8x128xf32>
    %87 = vector.shape_cast %86 : vector<4x8x128xf32> to vector<32x128xf32>
    %c0_57 = arith.constant 0 : index
    %c0_58 = arith.constant 0 : index
    %88 = vector.load %arg6[%c0_57, %c0_58] : memref<128x128xf32, #tpu.memory_space<vmem>>, vector<128x128xf32>
    %cst_59 = arith.constant dense<0.000000e+00> : vector<32x128xf32>
    %89 = tpu.matmul %87, %88, %cst_59 {dimension_numbers = #tpu.dot_dimension_numbers<[1], [0], [0], [1], [0, 0, 1, 1], [], []>} : vector<32x128xf32>, vector<128x128xf32>, vector<32x128xf32> -> vector<32x128xf32>
    %c0_60 = arith.constant 0 : index
    %c0_61 = arith.constant 0 : index
    %90 = vector.load %arg7[%c0_60, %c0_61] : memref<1x128xf32, #tpu.memory_space<vmem>>, vector<1x128xf32>
    %91 = vector.broadcast %90 : vector<1x128xf32> to vector<32x128xf32>
    %92 = arith.addf %89, %91 : vector<32x128xf32>
    %93 = vector.shape_cast %92 : vector<32x128xf32> to vector<4x8x128xf32>
    %c0_62 = arith.constant 0 : index
    %c0_63 = arith.constant 0 : index
    %c0_64 = arith.constant 0 : index
    %94 = vector.load %arg8[%c0_62, %c0_63, %c0_64] : memref<4x8x128xf32, #tpu.memory_space<vmem>>, vector<4x8x128xf32>
    tpu.vector_store %arg8[%c0_62, %c0_63, %c0_64], %93 {strides = array<i32>} : memref<4x8x128xf32, #tpu.memory_space<vmem>>, vector<4x8x128xf32>,
    return
  }
  func.func @transform_0(%arg0: i32, %arg1: i32) -> (i32, i32, i32) {
    %c0_i32 = arith.constant 0 : i32
    %c0_i32_0 = arith.constant 0 : i32
    return %arg1, %arg0, %c0_i32 : i32, i32, i32
  }
  func.func @transform_1(%arg0: i32, %arg1: i32) -> (i32, i32) {
    %c0_i32 = arith.constant 0 : i32
    %c0_i32_0 = arith.constant 0 : i32
    %c0_i32_1 = arith.constant 0 : i32
    return %c0_i32, %c0_i32_0 : i32, i32
  }
  func.func @transform_2(%arg0: i32, %arg1: i32) -> (i32, i32) {
    %c0_i32 = arith.constant 0 : i32
    %c0_i32_0 = arith.constant 0 : i32
    %c0_i32_1 = arith.constant 0 : i32
    return %c0_i32, %c0_i32_0 : i32, i32
  }
  func.func @transform_3(%arg0: i32, %arg1: i32) -> (i32, i32) {
    %c0_i32 = arith.constant 0 : i32
    %c0_i32_0 = arith.constant 0 : i32
    %c0_i32_1 = arith.constant 0 : i32
    return %c0_i32, %c0_i32_0 : i32, i32
  }
  func.func @transform_4(%arg0: i32, %arg1: i32) -> (i32, i32) {
    %c0_i32 = arith.constant 0 : i32
    %c0_i32_0 = arith.constant 0 : i32
    %c0_i32_1 = arith.constant 0 : i32
    return %c0_i32, %c0_i32_0 : i32, i32
  }
  func.func @transform_5(%arg0: i32, %arg1: i32) -> (i32, i32) {
    %c0_i32 = arith.constant 0 : i32
    %c0_i32_0 = arith.constant 0 : i32
    %c0_i32_1 = arith.constant 0 : i32
    return %c0_i32, %c0_i32_0 : i32, i32
  }
  func.func @transform_6(%arg0: i32, %arg1: i32) -> (i32, i32, i32) {
    %c0_i32 = arith.constant 0 : i32
    %c0_i32_0 = arith.constant 0 : i32
    return %arg1, %arg0, %c0_i32 : i32, i32, i32
  }
  func.func @transform_7(%arg0: i32, %arg1: i32) -> (i32, i32) {
    %c0_i32 = arith.constant 0 : i32
    %c0_i32_0 = arith.constant 0 : i32
    return %arg0, %c0_i32 : i32, i32
  }
}

</mosaic_0001>

<bundles_post_ra>
// kernel: tpu_custom_call.1
= control target key start
LH: loop header
LB: loop body
LE: loop exit
PB: predicated region body
PF: predicated region fallthrough
CT: control target
= control target key end

     0   :  { %s1496_s0 = inlined_call_operand.hbm [shape: f32[12,8,128], index: 0, kind: input, shape index: {}]   ;;  %s1497_s1 = inlined_call_operand.hbm [shape: f32[128,128], index: 1, kind: input, shape index: {}]   ;;  %s1498_s2 = inlined_call_operand.vmem [shape: f32[1,128], index: 2, kind: input, shape index: {}]   ;;  %s1499_s3 = inlined_call_operand.hbm [shape: f32[128,128], index: 3, kind: input, shape index: {}]   ;;  %s1500_s4 = inlined_call_operand.hbm [shape: f32[128,128], index: 4, kind: input, shape index: {}]   ;;  %s1501_s5 = inlined_call_operand.vmem [shape: f32[1,128], index: 5, kind: input, shape index: {}]   ;;  %s1502_s6 = inlined_call_operand.hbm [shape: f32[12,8,128], index: 6, kind: output, shape index: {0}]   ;;  %s1503_s7 = inlined_call_operand.hbm [shape: f32[8,128], index: 7, kind: output, shape index: {1}]  }
   0x1   :  { %1509 = sst [smem:[#allocation23_spill]] %s1497_s1 }
   0x2   :  { %1510 = sst [smem:[#allocation24_spill]] %s1499_s3 }
   0x3   :  { %1511 = sst [smem:[#allocation25_spill]] %s1500_s4 }
   0x4   :  { %13 = vsyncpa [#allocation5], 0 }
   0x5   :  { %15 = vsyncpa [#allocation5 + $0x1], 0 }
   0x6   :  { %16 = vsyncpa [#allocation8], 0 }
   0x7   :  { %17 = vsyncpa [#allocation11], 0 }
   0x8   :  { %18 = vsyncpa [#allocation6], 0 }
   0x9   :  { %20 = vsyncpa [#allocation6 + $0x1], 0 }
   0xa   :  { %21 = vsyncpa [#allocation14], 0  ;;  %s1232_s24 = smov 0   ;;  %s1234_s25 = smov 0  }
   0xb   :  { %s1236_s26 = smov 0   ;;  %s1238_s27 = smov 0  }
   0xc   :  { %s1240_s28 = smov 0   ;;  %s1242_s29 = smov 0  }
   0xd LB: > { %1512 = sst [smem:[#allocation20_spill]] %s1161_s24  ;;  %s796_s30 = sadd.s32 4294967295, %s1181_s29   ;;  %s1181_s29 = sphi %s1242_s29, %s27_s29   ;;  %s1177_s28 = sphi %s1240_s28, %s1535_s28   ;;  %s1173_s27 = sphi %s1238_s27, %s1534_s27   ;;  %s1169_s26 = sphi %s1236_s26, %s1533_s26   ;;  %s1165_s25 = sphi %s1234_s25, %s1532_s25   ;;  %s1161_s24 = sphi %s1232_s24, %s1531_s24  }
   0xe   : > { %s797_s8 = sadd.s32 4294967294, %s1181_s29   ;;  %p61_p0 = scmp.ne.s32.totalorder %s1165_s25, %s1161_s24 }
   0xf   : > { %p1266_p1 = scmp.eq.s32.totalorder %s796_s30, 0  ;;  %p1270_p2 = scmp.eq.s32.totalorder %s796_s30, 2 }
  0x10   : > { %p198_p3 = scmp.eq.s32.totalorder %s797_s8, 2  ;;  %p798_p5 = scmp.ge.s32.totalorder %s1181_s29, 1 }
  0x11   : > { %p1276_p4 = por %p1266_p1, %p61_p0  ;;  %p231_p7 = scmp.lt.s32.totalorder %s1181_s29, 4 }
  0x12   : > { %p1281_p6 = por %p198_p3, %p61_p0  ;;  %s1518_s1 = sld [smem:[#allocation23_spill]] }
  0x13   : > { %p1289_p8 = pnand %p798_p5, %p231_p7  ;;  %s1183_s17 = smov [#allocation7]  }
  0x14   : > { %s1516_s12 = scalar_select %p1281_p6, 1, 0 }
  0x15   : > { %p844_p9 = pneg %p1289_p8  ;;  %s244_s18 = sshll.u32 %s1183_s17, 4  ;;  %s245_s18 = int_to_ptr.vmem [resolvable:$true] %s244_s18 }
  0x16   : > { %1517 = sst [smem:[#allocation21_spill]] %s1516_s12  ;;  %s1504_s23 = smov 128  }
  0x17   : > { %p1297_p10 = pnand %p844_p9, %p1266_p1  ;;  %s1521_s3 = sld [smem:[#allocation24_spill]] }
  0x18   : > { %s242_s15 = sshll.u32 %s1518_s1, 4  ;;  %s1505_s30 = smov 8   ;;  %s243_s15 = int_to_ptr.hbm [resolvable:$true] %s242_s15 }
  0x19   : > { %847 = dma.hbm_to_vmem [thread:$0]  (!%p1297_p10), %s243_s15, 2048, %s245_s18, [#allocation8], %s1504_s23, %s1504_s23, %s1505_s30  }
  0x1a   : > { %s1186_s8 = smov [#allocation9]   ;;  %s1522_s4 = sld [smem:[#allocation25_spill]] }
  0x1b   : > { %s261_s13 = sshll.u32 %s1186_s8, 4  ;;  %s1187_s21 = smov [#allocation10]   ;;  %s262_s13 = int_to_ptr.vmem [resolvable:$true] %s261_s13 }
  0x1c   : > { %s275_s1 = sshll.u32 %s1187_s21, 4  ;;  %s36_s15 = sadd.s32 1, %s1177_s28  ;;  %s276_s1 = int_to_ptr.vmem [resolvable:$true] %s275_s1 }
  0x1d   : > { %s259_s22 = sshll.u32 %s1521_s3, 4  ;;  %p37_p11 = scmp.ge.s32.totalorder %s36_s15, 3  ;;  %s260_s22 = int_to_ptr.hbm [resolvable:$true] %s259_s22 }
  0x1e   : > { %850 = dma.hbm_to_vmem [thread:$0]  (!%p1297_p10), %s260_s22, 2048, %s262_s13, [#allocation8], %s1504_s23, %s1504_s23, %s1505_s30  }
  0x1f   : > { %s48_s18 = sadd.s32 1, %s1169_s26  ;;  %p55_p12 = scmp.ne.s32.totalorder %s1169_s26, %s1165_s25 }
  0x20   : > { %s273_s20 = sshll.u32 %s1522_s4, 4  ;;  %p56_p13 = scmp.eq.s32.totalorder %s1181_s29, 0  ;;  %s274_s20 = int_to_ptr.hbm [resolvable:$true] %s273_s20 }
  0x21   : > { %853 = dma.hbm_to_vmem [thread:$0]  (!%p1297_p10), %s274_s20, 2048, %s276_s1, [#allocation11], %s1504_s23, %s1504_s23, %s1505_s30  }
  0x22   : > { %s1537_s15 = smov (%p37_p11, %s36_s15), 0  ;;  %p1329_p0 = por %p56_p13, %p55_p12 }
  0x23   : > { %1523 = sst [smem:[#allocation22_spill]] %s1537_s15  ;;  %p1335_p3 = por %p1270_p2, %p55_p12 }
  0x24   : > { %s43_s8 = ssub.s32 %s1177_s28, %s1537_s15  ;;  %p865_p5 = scmp.lt.s32.totalorder %s1181_s29, 3 }
  0x25   : > { %p46_p7 = scmp.eq.s32.totalorder %s43_s8, 0  ;;  %s292_s1 = sand.u32 1, %s1169_s26  }
  0x26   : > { %s803_s13 = sshll.u32 %s292_s1, 5  ;;  %s822_s17 = sshll.u32 %s1177_s28, 5 }
  0x27   : > { %s1344_s14 = scalar_select %p46_p7, %s1169_s26, %s48_s18  }
  0x28   : > { %s302_s23 = scalar_lea.hbm %s1496_s0, %s822_s17  ;;  %s296_s30 = scalar_lea.vmem [#allocation4], %s803_s13 }
  0x29   : > { %s305_s3 = sshll.u32 %s296_s30, 4  ;;  %s303_s4 = sshll.u32 %s302_s23, 4  ;;  %s306_s3 = int_to_ptr.vmem [resolvable:$true] %s305_s3  ;;  %s304_s4 = int_to_ptr.hbm [resolvable:$true] %s303_s4 }
  0x2a   : > { %p855_p9 = pnand %p865_p5, %p1329_p0  ;;  %s293_s12 = scalar_lea.sflag [#allocation5], %s292_s1 }
  0x2b   : > { %s1526_s15 = smov 8   ;;  %s1527_s24 = smov 128  }
  0x2c   : > { %857 = dma.hbm_to_vmem [thread:$0]  (!%p855_p9), %s304_s4, 512, %s306_s3, %s293_s12, %s1527_s24, %s1527_s24, %s1526_s15  }
  0x2d   : > { %317 = sbr.rel (%p1289_p8) target bundleno = 864 (0x360), region = 44  ;;  %s1358_s18 = sand.u32 (!%p1289_p8), 1, %s1165_s25  }
  0x2e   : > { %s807_s30 = sshll.u32 (!%p1289_p8), %s1358_s18, 5  ;;  %s320_s23 = scalar_lea.sflag (!%p1289_p8), [#allocation5], %s1358_s18 }
  0x2f   : > { %s1362_s8 = scalar_lea.vmem (!%p1289_p8), [#allocation4], %s807_s30 }
  0x32   : > { %1140 = dma.done.wait (%p1276_p4), %s320_s23, 512  }
  0x33   : > { %1142 = vsyncadd (%p1276_p4), %s320_s23, 4294966784 }
  0x34   : > { %1144 = dma.done.wait (%p1266_p1), [#allocation8], 4096  }
  0x35   : > { %1146 = vsyncadd (%p1266_p1), [#allocation8], 4294963200 }
  0x36   : > { %1148 = dma.done.wait (%p1266_p1), [#allocation11], 2048  }
  0x37   : > { %1150 = vsyncadd (%p1266_p1), [#allocation11], 4294965248  ;;  %s1376_s3 = scalar_lea.vmem [#allocation12], %s807_s30  ;;  %p812_p8 = scmp.ne.s32.totalorder %s1173_s27, 0 }
  0x39   : > { %375 = sbr.rel (%p812_p8) target bundleno = 64 (0x40), region = 64 }
  0x3e   : > { %v1188_v0 = vmov 0.0  }
  0x3f   : > { %376 = vst [vmem:[#allocation2] sm:$0xff] %v1188_v0 }
  0x40 PF: > { %v412_v1 = vld [vmem:[#allocation7 + $0x78] sm:$0xff]  ;;  %v411_v2 = vld [vmem:[#allocation7 + $0x70] sm:$0xff]  ;;  %v410_v5 = vld [vmem:[#allocation7 + $0x68] sm:$0xff]  ;;  %s1433_s9 = sshll.u32 %s1173_s27, 2  ;;  %p814_p12 = scmp.ne.s32.totalorder %s1173_s27, 2 }
  0x41   : > { %417 = vmatpush.msra.mxu0 %v412_v1  ;;  %v1379_v3 = vld [vmem:[#allocation9 + $0x78] sm:$0xff]  ;;  %v1381_v4 = vld [vmem:[#allocation9 + $0x70] sm:$0xff]  ;;  %v1385_v6 = vld [vmem:[#allocation9 + $0x68] sm:$0xff]  ;;  %p472_p1 = scmp.lt.s32.totalorder %s1433_s9, 9  ;;  %s501_s12 = sadd.s32 1, %s1433_s9 }
  0x42   : > { %451 = vmatpush.msra.mxu2 %v1379_v3  ;;  %512 = vmatpush.msra.mxu3 %v1379_v3  ;;  %v409_v7 = vld [vmem:[#allocation7 + $0x60] sm:$0xff]  ;;  %v408_v9 = vld [vmem:[#allocation7 + $0x58] sm:$0xff]  ;;  %v407_v11 = vld [vmem:[#allocation7 + $0x50] sm:$0xff]  ;;  %p502_p4 = scmp.lt.s32.totalorder %s501_s12, 9  ;;  %s532_s15 = sadd.s32 2, %s1433_s9 }
  0x43   : > { %418 = vmatpush.msra.mxu0 %v411_v2  ;;  %v1389_v8 = vld [vmem:[#allocation9 + $0x60] sm:$0xff]  ;;  %v1393_v10 = vld [vmem:[#allocation9 + $0x58] sm:$0xff]  ;;  %v1397_v12 = vld [vmem:[#allocation9 + $0x50] sm:$0xff]  ;;  %s473_s11 = scalar_select %p472_p1, 0.1, 0.0 }
  0x44   : > { %452 = vmatpush.msra.mxu2 %v1381_v4  ;;  %513 = vmatpush.msra.mxu3 %v1381_v4  ;;  %v406_v13 = vld [vmem:[#allocation7 + $0x48] sm:$0xff]  ;;  %v405_v15 = vld [vmem:[#allocation7 + $0x40] sm:$0xff]  ;;  %v404_v17 = vld [vmem:[#allocation7 + $0x38] sm:$0xff]  ;;  %s503_s16 = scalar_select %p502_p4, 0.1, 0.0 }
  0x45   : > { %419 = vmatpush.msra.mxu0 %v410_v5  ;;  %v1401_v14 = vld [vmem:[#allocation9 + $0x48] sm:$0xff]  ;;  %v1405_v16 = vld [vmem:[#allocation9 + $0x40] sm:$0xff]  ;;  %v384_v18 = vld [vmem:[#allocation9 + $0x38] sm:$0xff]  ;;  %v477_v41 = vstv %s473_s11  ;;  %p533_p10 = scmp.lt.s32.totalorder %s532_s15, 9  ;;  %s563_s1 = sadd.s32 3, %s1433_s9 }
  0x46   : > { %453 = vmatpush.msra.mxu2 %v1385_v6  ;;  %514 = vmatpush.msra.mxu3 %v1385_v6  ;;  %v403_v19 = vld [vmem:[#allocation7 + $0x30] sm:$0xff]  ;;  %v402_v21 = vld [vmem:[#allocation7 + $0x28] sm:$0xff]  ;;  %v401_v23 = vld [vmem:[#allocation7 + $0x20] sm:$0xff]  ;;  %v508_v50 = vstv %s503_s16  ;;  %p564_p11 = scmp.lt.s32.totalorder %s563_s1, 9 }
  0x47   : > { %420 = vmatpush.msra.mxu0 %v409_v7  ;;  %v383_v20 = vld [vmem:[#allocation9 + $0x30] sm:$0xff]  ;;  %v382_v22 = vld [vmem:[#allocation9 + $0x28] sm:$0xff]  ;;  %v381_v24 = vld [vmem:[#allocation9 + $0x20] sm:$0xff]  ;;  %s534_s22 = scalar_select %p533_p10, 0.1, 0.0 }
  0x48   : > { %454 = vmatpush.msra.mxu2 %v1389_v8  ;;  %515 = vmatpush.msra.mxu3 %v1389_v8  ;;  %v400_v25 = vld [vmem:[#allocation7 + $0x18] sm:$0xff]  ;;  %v399_v27 = vld [vmem:[#allocation7 + $0x10] sm:$0xff]  ;;  %v398_v29 = vld [vmem:[#allocation7 + $0x8] sm:$0xff]  ;;  %s565_s13 = scalar_select %p564_p11, 0.1, 0.0 }
  0x49   : > { %421 = vmatpush.msra.mxu0 %v408_v9  ;;  %v380_v26 = vld [vmem:[#allocation9 + $0x18] sm:$0xff]  ;;  %v379_v28 = vld [vmem:[#allocation9 + $0x10] sm:$0xff]  ;;  %v378_v30 = vld [vmem:[#allocation9 + $0x8] sm:$0xff]  ;;  %v539_v59 = vstv %s534_s22 }
  0x4a   : > { %455 = vmatpush.msra.mxu2 %v1393_v10  ;;  %516 = vmatpush.msra.mxu3 %v1393_v10  ;;  %v397_v31 = vld [vmem:[#allocation7] sm:$0xff]  ;;  %v450_v34 = vld [vmem:[#allocation2] sm:$0xff]  ;;  %v394_v35 = vld [vmem:[%s1362_s8 + $0x8] sm:$0xff] }
  0x4b   : > { %422 = vmatpush.msra.mxu0 %v407_v11  ;;  %v393_v32 = vld [vmem:[%s1362_s8] sm:$0xff]  ;;  %v929_v36 = vld [vmem:[%s1498_s2] ss:$0 sm:$0xff]  ;;  %v395_v45 = vld [vmem:[%s1362_s8 + $0x10] sm:$0xff] }
  0x4c   : > { %456 = vmatpush.msra.mxu2 %v1397_v12  ;;  %517 = vmatpush.msra.mxu3 %v1397_v12  ;;  %v377_v33 = vld [vmem:[#allocation9] sm:$0xff]  ;;  %v396_v54 = vld [vmem:[%s1362_s8 + $0x18] sm:$0xff] }
  0x4d   : > { %423 = vmatpush.msra.mxu0 %v406_v13 }
  0x4e   : > { %457 = vmatpush.msra.mxu2 %v1401_v14  ;;  %518 = vmatpush.msra.mxu3 %v1401_v14 }
  0x4f   : > { %424 = vmatpush.msra.mxu0 %v405_v15 }
  0x50   : > { %458 = vmatpush.msra.mxu2 %v1405_v16  ;;  %519 = vmatpush.msra.mxu3 %v1405_v16 }
  0x51   : > { %425 = vmatpush.msra.mxu0 %v404_v17 }
  0x52   : > { %459 = vmatpush.msra.mxu2 %v384_v18  ;;  %520 = vmatpush.msra.mxu3 %v384_v18 }
  0x53   : > { %426 = vmatpush.msra.mxu0 %v403_v19 }
  0x54   : > { %460 = vmatpush.msra.mxu2 %v383_v20  ;;  %521 = vmatpush.msra.mxu3 %v383_v20 }
  0x55   : > { %427 = vmatpush.msra.mxu0 %v402_v21 }
  0x56   : > { %461 = vmatpush.msra.mxu2 %v382_v22  ;;  %522 = vmatpush.msra.mxu3 %v382_v22 }
  0x57   : > { %428 = vmatpush.msra.mxu0 %v401_v23 }
  0x58   : > { %462 = vmatpush.msra.mxu2 %v381_v24  ;;  %523 = vmatpush.msra.mxu3 %v381_v24 }
  0x59   : > { %429 = vmatpush.msra.mxu0 %v400_v25 }
  0x5a   : > { %463 = vmatpush.msra.mxu2 %v380_v26  ;;  %524 = vmatpush.msra.mxu3 %v380_v26 }
  0x5b   : > { %430 = vmatpush.msra.mxu0 %v399_v27 }
  0x5c   : > { %464 = vmatpush.msra.mxu2 %v379_v28  ;;  %525 = vmatpush.msra.mxu3 %v379_v28 }
  0x5d   : > { %431 = vmatpush.msra.mxu0 %v398_v29 }
  0x5e   : > { %465 = vmatpush.msra.mxu2 %v378_v30  ;;  %526 = vmatpush.msra.mxu3 %v378_v30 }
  0x5f   : > { %432 = vmatpush.msra.mxu0 %v397_v31 }
  0x60   : > { %433 = vmatmul.f32.vlgmr.msra.gmra.mxu0 %v393_v32  ;;  %466 = vmatpush.msra.mxu2 %v377_v33 }
  0x61   : > { %467 = vmatmul.f32.vlgmr.msra.gmra.mxu2 %v450_v34  ;;  %527 = vmatpush.msra.mxu3 %v377_v33 }
  0x62   : > { %481 = vmatpush.msrb.mxu2 %v1379_v3  ;;  %543 = vmatpush.msrb.mxu0 %v1379_v3  ;;  %v570_v3 = vstv %s565_s13 }
  0x64   : > { %482 = vmatpush.msrb.mxu2 %v1381_v4  ;;  %544 = vmatpush.msrb.mxu0 %v1381_v4 }
  0x66   : > { %483 = vmatpush.msrb.mxu2 %v1385_v6  ;;  %545 = vmatpush.msrb.mxu0 %v1385_v6 }
  0x68   : > { %484 = vmatpush.msrb.mxu2 %v1389_v8  ;;  %546 = vmatpush.msrb.mxu0 %v1389_v8 }
  0x69   : > { %436 = vmatmul.f32.gmra.mxu0 %v394_v35 }
  0x6a   : > { %485 = vmatpush.msrb.mxu2 %v1393_v10  ;;  %547 = vmatpush.msrb.mxu0 %v1393_v10 }
  0x6c   : > { %486 = vmatpush.msrb.mxu2 %v1397_v12  ;;  %548 = vmatpush.msrb.mxu0 %v1397_v12 }
  0x6e   : > { %487 = vmatpush.msrb.mxu2 %v1401_v14  ;;  %549 = vmatpush.msrb.mxu0 %v1401_v14 }
  0x70   : > { %488 = vmatpush.msrb.mxu2 %v1405_v16  ;;  %550 = vmatpush.msrb.mxu0 %v1405_v16 }
  0x71   : > { %439 = vmatmul.f32.gmra.mxu0 %v395_v45 }
  0x72   : > { %489 = vmatpush.msrb.mxu2 %v384_v18  ;;  %551 = vmatpush.msrb.mxu0 %v384_v18 }
  0x74   : > { %490 = vmatpush.msrb.mxu2 %v383_v20  ;;  %552 = vmatpush.msrb.mxu0 %v383_v20 }
  0x76   : > { %491 = vmatpush.msrb.mxu2 %v382_v22  ;;  %553 = vmatpush.msrb.mxu0 %v382_v22 }
  0x78   : > { %492 = vmatpush.msrb.mxu2 %v381_v24  ;;  %554 = vmatpush.msrb.mxu0 %v381_v24 }
  0x79   : > { %442 = vmatmul.f32.gmra.mxu0 %v396_v54 }
  0x7a   : > { %493 = vmatpush.msrb.mxu2 %v380_v26  ;;  %555 = vmatpush.msrb.mxu0 %v380_v26 }
  0x7c   : > { %494 = vmatpush.msrb.mxu2 %v379_v28  ;;  %556 = vmatpush.msrb.mxu0 %v379_v28 }
  0x7e   : > { %495 = vmatpush.msrb.mxu2 %v378_v30  ;;  %557 = vmatpush.msrb.mxu0 %v378_v30 }
  0x80   : > { %496 = vmatpush.msrb.mxu2 %v377_v33  ;;  %558 = vmatpush.msrb.mxu0 %v377_v33 }
  0xdd   : > { %v434_v37 = vpop.f32.mrf.mxu0 }
  0xde   : > { %v435_v38 = vadd.f32 %v929_v36, %v434_v37 }
  0xe4   : > { %v468_v39 = vpop.f32.mrf.mxu2 }
  0xe5   : > { %v475_v40 = vsub.f32 %v435_v38, %v468_v39 }
  0xe6   : > { %v437_v46 = vpop.f32.mrf.mxu0 }
  0xe7   : > { %930 = vtanh.f32 %v475_v40  ;;  %v438_v47 = vadd.f32 %v929_v36, %v437_v46 }
  0xed   : > { %v931_v42 = vpop.eup %930 }
  0xee   : > { %v478_v43 = vmul.f32 %v931_v42, %v477_v41  ;;  %v440_v55 = vpop.f32.mrf.mxu0 }
  0xef   : > { %v441_v56 = vadd.f32 %v929_v36, %v440_v55 }
  0xf0   : > { %v479_v44 = vadd.f32 %v478_v43, %v450_v34 }
  0xf2   : > { %480 = vst [vmem:[#allocation3 + $0x10] sm:$0xff] %v479_v44  ;;  %497 = vmatmul.f32.vlgmr.msrb.gmra.mxu2 %v479_v44 }
  0xf6   : > { %v443_v63 = vpop.f32.mrf.mxu0 }
  0xf7   : > { %v444_v0 = vadd.f32 %v929_v36, %v443_v63 }
 0x175   : > { %v498_v48 = vpop.f32.mrf.mxu2 }
 0x176   : > { %v506_v49 = vsub.f32 %v438_v47, %v498_v48 }
 0x178   : > { %932 = vtanh.f32 %v506_v49 }
 0x17e   : > { %v933_v51 = vpop.eup %932 }
 0x17f   : > { %v509_v52 = vmul.f32 %v933_v51, %v508_v50 }
 0x181   : > { %v510_v53 = vadd.f32 %v509_v52, %v479_v44 }
 0x183   : > { %511 = vst [vmem:[#allocation3] sm:$0xff] %v510_v53  ;;  %528 = vmatmul.f32.vlgmr.msra.gmra.mxu3 %v510_v53 }
 0x206   : > { %v529_v57 = vpop.f32.mrf.mxu3 }
 0x207   : > { %v537_v58 = vsub.f32 %v441_v56, %v529_v57 }
 0x209   : > { %934 = vtanh.f32 %v537_v58 }
 0x20f   : > { %v935_v60 = vpop.eup %934 }
 0x210   : > { %v540_v61 = vmul.f32 %v935_v60, %v539_v59 }
 0x212   : > { %v541_v62 = vadd.f32 %v540_v61, %v510_v53 }
 0x214   : > { %542 = vst [vmem:[#allocation3 + $0x18] sm:$0xff] %v541_v62  ;;  %559 = vmatmul.f32.vlgmr.msrb.gmra.mxu0 %v541_v62 }
 0x291   : > { %v560_v1 = vpop.f32.mrf.mxu0 }
 0x292   : > { %v568_v2 = vsub.f32 %v444_v0, %v560_v1 }
 0x294   : > { %936 = vtanh.f32 %v568_v2 }
 0x29a   : > { %v937_v4 = vpop.eup %936 }
 0x29b   : > { %v571_v5 = vmul.f32 %v937_v4, %v570_v3 }
 0x29c   : > { %578 = sbr.rel (%p814_p12) target bundleno = 674 (0x2a2), region = 68 }
 0x29d   : > { %v572_v6 = vadd.f32 %v571_v5, %v541_v62 }
 0x29f   : > { %573 = vst [vmem:[#allocation3 + $0x8] sm:$0xff] %v572_v6 }
 0x2a0   : > { %574 = vst [vmem:[#allocation2] sm:$0xff] %v572_v6 }
 0x2a1   : > { %579 = vst [vmem:[#allocation13] sm:$0xff] %v572_v6 }
 0x2a2 PF: > { %v599_v7 = vld [vmem:[#allocation10 + $0x78] sm:$0xff]  ;;  %v598_v8 = vld [vmem:[#allocation10 + $0x70] sm:$0xff]  ;;  %v597_v9 = vld [vmem:[#allocation10 + $0x68] sm:$0xff]  ;;  %s1189_s17 = smov [#allocation13]   ;;  %s670_s23 = sshll.u32 %s1503_s7, 4  ;;  %s671_s23 = int_to_ptr.hbm [resolvable:$true] %s670_s23 }
 0x2a3   : > { %604 = vmatpush.msra.mxu1 %v599_v7  ;;  %v596_v10 = vld [vmem:[#allocation10 + $0x60] sm:$0xff]  ;;  %v595_v11 = vld [vmem:[#allocation10 + $0x58] sm:$0xff]  ;;  %v594_v12 = vld [vmem:[#allocation10 + $0x50] sm:$0xff]  ;;  %s668_s20 = sshll.u32 %s1189_s17, 4  ;;  %s823_s24 = sshll.u32 %s1173_s27, 5  ;;  %s669_s20 = int_to_ptr.vmem [resolvable:$true] %s668_s20 }
 0x2a4   : > { %v593_v13 = vld [vmem:[#allocation10 + $0x48] sm:$0xff]  ;;  %v592_v14 = vld [vmem:[#allocation10 + $0x40] sm:$0xff]  ;;  %v591_v15 = vld [vmem:[#allocation10 + $0x38] sm:$0xff]  ;;  %840 = dma.vmem_to_hbm [thread:$0]  (%p1270_p2), %s669_s20, 128, %s671_s23, [#allocation14]  }
 0x2a5   : > { %605 = vmatpush.msra.mxu1 %v598_v8  ;;  %v590_v16 = vld [vmem:[#allocation10 + $0x30] sm:$0xff]  ;;  %v589_v17 = vld [vmem:[#allocation10 + $0x28] sm:$0xff]  ;;  %v588_v18 = vld [vmem:[#allocation10 + $0x20] sm:$0xff]  ;;  %s650_s12 = scalar_lea.hbm %s1502_s6, %s823_s24  ;;  %s651_s16 = sshll.u32 %s1376_s3, 4  ;;  %s652_s16 = int_to_ptr.vmem [resolvable:$true] %s651_s16 }
 0x2a6   : > { %v587_v19 = vld [vmem:[#allocation10 + $0x18] sm:$0xff]  ;;  %v586_v20 = vld [vmem:[#allocation10 + $0x10] sm:$0xff]  ;;  %v585_v21 = vld [vmem:[#allocation10 + $0x8] sm:$0xff]  ;;  %s653_s15 = sshll.u32 %s650_s12, 4  ;;  %s638_s22 = scalar_lea.sflag [#allocation6], %s1358_s18  ;;  %s654_s15 = int_to_ptr.hbm [resolvable:$true] %s653_s15 }
 0x2a7   : > { %606 = vmatpush.msra.mxu1 %v597_v9  ;;  %v584_v22 = vld [vmem:[#allocation10] sm:$0xff]  ;;  %v580_v23 = vld [vmem:[#allocation3 + $0x10] sm:$0xff]  ;;  %v582_v25 = vld [vmem:[#allocation3 + $0x18] sm:$0xff]  ;;  %s1101_s1 = sshra.s32 %s654_s15, 4  ;;  %s1107_s20 = scalar_lea.hbm %s1502_s6, 96  ;;  %s1102_s1 = int_to_ptr.hbm [resolvable:$true] %s1101_s1 }
 0x2a8   : > { %v581_v24 = vld [vmem:[#allocation3] sm:$0xff]  ;;  %v583_v26 = vld [vmem:[#allocation3 + $0x8] sm:$0xff]  ;;  %v938_v27 = vld [vmem:[%s1501_s5] ss:$0 sm:$0xff]  ;;  %s1103_s13 = scalar_lea.hbm %s1102_s1, 32  ;;  %p1108_p7 = scmp.lt.s32.totalorder %s1102_s1, %s1502_s6 }
 0x2a9   : > { %607 = vmatpush.msra.mxu1 %v596_v10  ;;  %p1104_p13 = scmp.ne.s32.totalorder %s1102_s1, %s1103_s13  ;;  %p1109_p9 = scmp.lt.s32.totalorder %s1107_s20, %s1103_s13 }
 0x2ab   : > { %608 = vmatpush.msra.mxu1 %v595_v11  ;;  %p1105_p0 = pnand %p1104_p13, %p1335_p3  ;;  %p1110_p8 = por %p1109_p9, %p1108_p7 }
 0x2ad   : > { %609 = vmatpush.msra.mxu1 %v594_v12  ;;  %p1106_p5 = pneg %p1105_p0 }
 0x2af   : > { %610 = vmatpush.msra.mxu1 %v593_v13  ;;  %p1111_p1 = pnand %p1110_p8, %p1106_p5 }
 0x2b1   : > { %611 = vmatpush.msra.mxu1 %v592_v14 }
 0x2b3   : > { %612 = vmatpush.msra.mxu1 %v591_v15 }
 0x2b5   : > { %613 = vmatpush.msra.mxu1 %v590_v16 }
 0x2b7   : > { %614 = vmatpush.msra.mxu1 %v589_v17 }
 0x2b9   : > { %615 = vmatpush.msra.mxu1 %v588_v18 }
 0x2bb   : > { %616 = vmatpush.msra.mxu1 %v587_v19 }
 0x2bd   : > { %617 = vmatpush.msra.mxu1 %v586_v20 }
 0x2bf   : > { %618 = vmatpush.msra.mxu1 %v585_v21 }
 0x2c1   : > { %619 = vmatpush.msra.mxu1 %v584_v22 }
 0x2c2   : > { %620 = vmatmul.f32.vlgmr.msra.gmra.mxu1 %v580_v23 }
 0x2ca   : > { %623 = vmatmul.f32.gmra.mxu1 %v581_v24 }
 0x2d2   : > { %626 = vmatmul.f32.gmra.mxu1 %v582_v25 }
 0x2da   : > { %629 = vmatmul.f32.gmra.mxu1 %v583_v26 }
 0x33f   : > { %v621_v28 = vpop.f32.mrf.mxu1 }
 0x340   : > { %v622_v29 = vadd.f32 %v938_v27, %v621_v28 }
 0x342   : > { %633 = vst [vmem:[%s1376_s3] sm:$0xff] %v622_v29 }
 0x347   : > { %v624_v30 = vpop.f32.mrf.mxu1 }
 0x348   : > { %v625_v31 = vadd.f32 %v938_v27, %v624_v30 }
 0x34a   : > { %634 = vst [vmem:[%s1376_s3 + $0x8] sm:$0xff] %v625_v31 }
 0x34f   : > { %v627_v32 = vpop.f32.mrf.mxu1 }
 0x350   : > { %v628_v33 = vadd.f32 %v938_v27, %v627_v32 }
 0x352   : > { %635 = vst [vmem:[%s1376_s3 + $0x10] sm:$0xff] %v628_v33 }
 0x357   : > { %v630_v34 = vpop.f32.mrf.mxu1 }
 0x358   : > { %v631_v35 = vadd.f32 %v938_v27, %v630_v34 }
 0x35a   : > { %636 = vst [vmem:[%s1376_s3 + $0x18] sm:$0xff] %v631_v35 }
 0x35b   : > { %1114 = shalt.err (!%p1111_p1)
}
 0x35c   : > { %s1190_s18 = smov 128   ;;  %s1191_s3 = smov 8  }
 0x35d   : > { %838 = dma.vmem_to_hbm [thread:$0]  (%p1335_p3), %s652_s16, 512, %s654_s15, %s638_s22, %s1190_s18, %s1190_s18, %s1191_s3  }
 0x35e   : > { %1152 = dma.done.wait (%p1270_p2), [#allocation14], 128  }
 0x35f   : > { %1154 = vsyncadd (%p1270_p2), [#allocation14], 4294967168 }
 0x360 PF: > { %s1528_s23 = sld [smem:[#allocation20_spill]]  ;;  %p871_p4 = scmp.ge.s32.totalorder %s1181_s29, 2 }
 0x362   : > { %p859_p10 = pnand %p871_p4, %p1281_p6 }
 0x364   : > { %p860_p11 = pneg %p859_p10 }
 0x366   : > { %s687_s4 = sand.u32 1, %s1528_s23  }
 0x367   : > { %s688_s24 = scalar_lea.sflag [#allocation6], %s687_s4 }
 0x368   : > { %1156 = dma.done.wait (%p860_p11), %s688_s24, 512  }
 0x369   : > { %1158 = vsyncadd (%p860_p11), %s688_s24, 4294966784  ;;  %s27_s29 = sadd.s32 1, %s1181_s29   ;;  %s1530_s10 = sld [smem:[#allocation22_spill]] }
 0x36a   : > { %p24_p3 = scmp.ge.s32.totalorder %s27_s29, 5   ;;  %s1531_s24 = smov %s1165_s25 }
 0x36b   : > { %s1532_s25 = smov %s1169_s26  ;;  %s1533_s26 = smov %s1344_s14 }
 0x36c   : > { %s1534_s27 = smov %s1177_s28  ;;  %26 = sbr.rel (!%p24_p3) target bundleno = 13 (0xd), region = 121 }
 0x36f   : > { %s1535_s28 = smov %s1530_s10 }
 0x371   :  { %694 = vsyncpa [#allocation5], 1 }
 0x372   :  { %696 = vsyncpa [#allocation5 + $0x1], 1 }
 0x373   :  { %697 = vsyncpa [#allocation8], 1 }
 0x374   :  { %698 = vsyncpa [#allocation11], 1 }
 0x375   :  { %699 = vsyncpa [#allocation6], 1 }
 0x376   :  { %701 = vsyncpa [#allocation6 + $0x1], 1 }
 0x377   :  { %702 = vsyncpa [#allocation14], 1 }

// kernel: tpu_custom_call.1
= control target key start
LH: loop header
LB: loop body
LE: loop exit
PB: predicated region body
PF: predicated region fallthrough
CT: control target
= control target key end

     0   :  { %s1496_s0 = inlined_call_operand.hbm [shape: f32[12,8,128], index: 0, kind: input, shape index: {}]   ;;  %s1497_s1 = inlined_call_operand.hbm [shape: f32[128,128], index: 1, kind: input, shape index: {}]   ;;  %s1498_s2 = inlined_call_operand.vmem [shape: f32[1,128], index: 2, kind: input, shape index: {}]   ;;  %s1499_s3 = inlined_call_operand.hbm [shape: f32[128,128], index: 3, kind: input, shape index: {}]   ;;  %s1500_s4 = inlined_call_operand.hbm [shape: f32[128,128], index: 4, kind: input, shape index: {}]   ;;  %s1501_s5 = inlined_call_operand.vmem [shape: f32[1,128], index: 5, kind: input, shape index: {}]   ;;  %s1502_s6 = inlined_call_operand.hbm [shape: f32[12,8,128], index: 6, kind: output, shape index: {0}]   ;;  %s1503_s7 = inlined_call_operand.hbm [shape: f32[8,128], index: 7, kind: output, shape index: {1}]  }
   0x1   :  { %1509 = sst [smem:[#allocation23_spill]] %s1497_s1 }
   0x2   :  { %1510 = sst [smem:[#allocation24_spill]] %s1499_s3 }
   0x3   :  { %1511 = sst [smem:[#allocation25_spill]] %s1500_s4 }
   0x4   :  { %13 = vsyncpa [#allocation5], 0 }
   0x5   :  { %15 = vsyncpa [#allocation5 + $0x1], 0 }
   0x6   :  { %16 = vsyncpa [#allocation8], 0 }
   0x7   :  { %17 = vsyncpa [#allocation11], 0 }
   0x8   :  { %18 = vsyncpa [#allocation6], 0 }
   0x9   :  { %20 = vsyncpa [#allocation6 + $0x1], 0 }
   0xa   :  { %21 = vsyncpa [#allocation14], 0  ;;  %s1232_s24 = smov 0   ;;  %s1234_s25 = smov 0  }
   0xb   :  { %s1236_s26 = smov 0   ;;  %s1238_s27 = smov 0  }
   0xc   :  { %s1240_s28 = smov 0   ;;  %s1242_s29 = smov 0  }
   0xd LB: > { %1512 = sst [smem:[#allocation20_spill]] %s1161_s24  ;;  %s796_s30 = sadd.s32 4294967295, %s1181_s29   ;;  %s1181_s29 = sphi %s1242_s29, %s27_s29   ;;  %s1177_s28 = sphi %s1240_s28, %s1535_s28   ;;  %s1173_s27 = sphi %s1238_s27, %s1534_s27   ;;  %s1169_s26 = sphi %s1236_s26, %s1533_s26   ;;  %s1165_s25 = sphi %s1234_s25, %s1532_s25   ;;  %s1161_s24 = sphi %s1232_s24, %s1531_s24  }
   0xe   : > { %s797_s8 = sadd.s32 4294967294, %s1181_s29   ;;  %p61_p0 = scmp.ne.s32.totalorder %s1165_s25, %s1161_s24 }
   0xf   : > { %p1266_p1 = scmp.eq.s32.totalorder %s796_s30, 0  ;;  %p1270_p2 = scmp.eq.s32.totalorder %s796_s30, 2 }
  0x10   : > { %p198_p3 = scmp.eq.s32.totalorder %s797_s8, 2  ;;  %p798_p5 = scmp.ge.s32.totalorder %s1181_s29, 1 }
  0x11   : > { %p1276_p4 = por %p1266_p1, %p61_p0  ;;  %p231_p7 = scmp.lt.s32.totalorder %s1181_s29, 4 }
  0x12   : > { %p1281_p6 = por %p198_p3, %p61_p0  ;;  %s1518_s1 = sld [smem:[#allocation23_spill]] }
  0x13   : > { %p1289_p8 = pnand %p798_p5, %p231_p7  ;;  %s1183_s17 = smov [#allocation7]  }
  0x14   : > { %s1516_s12 = scalar_select %p1281_p6, 1, 0 }
  0x15   : > { %p844_p9 = pneg %p1289_p8  ;;  %s244_s18 = sshll.u32 %s1183_s17, 4  ;;  %s245_s18 = int_to_ptr.vmem [resolvable:$true] %s244_s18 }
  0x16   : > { %1517 = sst [smem:[#allocation21_spill]] %s1516_s12  ;;  %s1504_s23 = smov 128  }
  0x17   : > { %p1297_p10 = pnand %p844_p9, %p1266_p1  ;;  %s1521_s3 = sld [smem:[#allocation24_spill]] }
  0x18   : > { %s242_s15 = sshll.u32 %s1518_s1, 4  ;;  %s1505_s30 = smov 8   ;;  %s243_s15 = int_to_ptr.hbm [resolvable:$true] %s242_s15 }
  0x19   : > { %847 = dma.hbm_to_vmem [thread:$0]  (!%p1297_p10), %s243_s15, 2048, %s245_s18, [#allocation8], %s1504_s23, %s1504_s23, %s1505_s30  }
  0x1a   : > { %s1186_s8 = smov [#allocation9]   ;;  %s1522_s4 = sld [smem:[#allocation25_spill]] }
  0x1b   : > { %s261_s13 = sshll.u32 %s1186_s8, 4  ;;  %s1187_s21 = smov [#allocation10]   ;;  %s262_s13 = int_to_ptr.vmem [resolvable:$true] %s261_s13 }
  0x1c   : > { %s275_s1 = sshll.u32 %s1187_s21, 4  ;;  %s36_s15 = sadd.s32 1, %s1177_s28  ;;  %s276_s1 = int_to_ptr.vmem [resolvable:$true] %s275_s1 }
  0x1d   : > { %s259_s22 = sshll.u32 %s1521_s3, 4  ;;  %p37_p11 = scmp.ge.s32.totalorder %s36_s15, 3  ;;  %s260_s22 = int_to_ptr.hbm [resolvable:$true] %s259_s22 }
  0x1e   : > { %850 = dma.hbm_to_vmem [thread:$0]  (!%p1297_p10), %s260_s22, 2048, %s262_s13, [#allocation8], %s1504_s23, %s1504_s23, %s1505_s30  }
  0x1f   : > { %s48_s18 = sadd.s32 1, %s1169_s26  ;;  %p55_p12 = scmp.ne.s32.totalorder %s1169_s26, %s1165_s25 }
  0x20   : > { %s273_s20 = sshll.u32 %s1522_s4, 4  ;;  %p56_p13 = scmp.eq.s32.totalorder %s1181_s29, 0  ;;  %s274_s20 = int_to_ptr.hbm [resolvable:$true] %s273_s20 }
  0x21   : > { %853 = dma.hbm_to_vmem [thread:$0]  (!%p1297_p10), %s274_s20, 2048, %s276_s1, [#allocation11], %s1504_s23, %s1504_s23, %s1505_s30  }
  0x22   : > { %s1537_s15 = smov (%p37_p11, %s36_s15), 0  ;;  %p1329_p0 = por %p56_p13, %p55_p12 }
  0x23   : > { %1523 = sst [smem:[#allocation22_spill]] %s1537_s15  ;;  %p1335_p3 = por %p1270_p2, %p55_p12 }
  0x24   : > { %s43_s8 = ssub.s32 %s1177_s28, %s1537_s15  ;;  %p865_p5 = scmp.lt.s32.totalorder %s1181_s29, 3 }
  0x25   : > { %p46_p7 = scmp.eq.s32.totalorder %s43_s8, 0  ;;  %s292_s1 = sand.u32 1, %s1169_s26  }
  0x26   : > { %s803_s13 = sshll.u32 %s292_s1, 5  ;;  %s822_s17 = sshll.u32 %s1177_s28, 5 }
  0x27   : > { %s1344_s14 = scalar_select %p46_p7, %s1169_s26, %s48_s18  }
  0x28   : > { %s302_s23 = scalar_lea.hbm %s1496_s0, %s822_s17  ;;  %s296_s30 = scalar_lea.vmem [#allocation4], %s803_s13 }
  0x29   : > { %s305_s3 = sshll.u32 %s296_s30, 4  ;;  %s303_s4 = sshll.u32 %s302_s23, 4  ;;  %s306_s3 = int_to_ptr.vmem [resolvable:$true] %s305_s3  ;;  %s304_s4 = int_to_ptr.hbm [resolvable:$true] %s303_s4 }
  0x2a   : > { %p855_p9 = pnand %p865_p5, %p1329_p0  ;;  %s293_s12 = scalar_lea.sflag [#allocation5], %s292_s1 }
  0x2b   : > { %s1526_s15 = smov 8   ;;  %s1527_s24 = smov 128  }
  0x2c   : > { %857 = dma.hbm_to_vmem [thread:$0]  (!%p855_p9), %s304_s4, 512, %s306_s3, %s293_s12, %s1527_s24, %s1527_s24, %s1526_s15  }
  0x2d   : > { %317 = sbr.rel (%p1289_p8) target bundleno = 864 (0x360), region = 44  ;;  %s1358_s18 = sand.u32 (!%p1289_p8), 1, %s1165_s25  }
  0x2e   : > { %s807_s30 = sshll.u32 (!%p1289_p8), %s1358_s18, 5  ;;  %s320_s23 = scalar_lea.sflag (!%p1289_p8), [#allocation5], %s1358_s18 }
  0x2f   : > { %s1362_s8 = scalar_lea.vmem (!%p1289_p8), [#allocation4], %s807_s30 }
  0x32   : > { %1140 = dma.done.wait (%p1276_p4), %s320_s23, 512  }
  0x33   : > { %1142 = vsyncadd (%p1276_p4), %s320_s23, 4294966784 }
  0x34   : > { %1144 = dma.done.wait (%p1266_p1), [#allocation8], 4096  }
  0x35   : > { %1146 = vsyncadd (%p1266_p1), [#allocation8], 4294963200 }
  0x36   : > { %1148 = dma.done.wait (%p1266_p1), [#allocation11], 2048  }
  0x37   : > { %1150 = vsyncadd (%p1266_p1), [#allocation11], 4294965248  ;;  %s1376_s3 = scalar_lea.vmem [#allocation12], %s807_s30  ;;  %p812_p8 = scmp.ne.s32.totalorder %s1173_s27, 0 }
  0x39   : > { %375 = sbr.rel (%p812_p8) target bundleno = 64 (0x40), region = 64 }
  0x3e   : > { %v1188_v0 = vmov 0.0  }
  0x3f   : > { %376 = vst [vmem:[#allocation2] sm:$0xff] %v1188_v0 }
  0x40 PF: > { %v412_v1 = vld [vmem:[#allocation7 + $0x78] sm:$0xff]  ;;  %v411_v2 = vld [vmem:[#allocation7 + $0x70] sm:$0xff]  ;;  %v410_v5 = vld [vmem:[#allocation7 + $0x68] sm:$0xff]  ;;  %s1433_s9 = sshll.u32 %s1173_s27, 2  ;;  %p814_p12 = scmp.ne.s32.totalorder %s1173_s27, 2 }
  0x41   : > { %417 = vmatpush.msra.mxu0 %v412_v1  ;;  %v1379_v3 = vld [vmem:[#allocation9 + $0x78] sm:$0xff]  ;;  %v1381_v4 = vld [vmem:[#allocation9 + $0x70] sm:$0xff]  ;;  %v1385_v6 = vld [vmem:[#allocation9 + $0x68] sm:$0xff]  ;;  %p472_p1 = scmp.lt.s32.totalorder %s1433_s9, 9  ;;  %s501_s12 = sadd.s32 1, %s1433_s9 }
  0x42   : > { %451 = vmatpush.msra.mxu2 %v1379_v3  ;;  %512 = vmatpush.msra.mxu3 %v1379_v3  ;;  %v409_v7 = vld [vmem:[#allocation7 + $0x60] sm:$0xff]  ;;  %v408_v9 = vld [vmem:[#allocation7 + $0x58] sm:$0xff]  ;;  %v407_v11 = vld [vmem:[#allocation7 + $0x50] sm:$0xff]  ;;  %p502_p4 = scmp.lt.s32.totalorder %s501_s12, 9  ;;  %s532_s15 = sadd.s32 2, %s1433_s9 }
  0x43   : > { %418 = vmatpush.msra.mxu0 %v411_v2  ;;  %v1389_v8 = vld [vmem:[#allocation9 + $0x60] sm:$0xff]  ;;  %v1393_v10 = vld [vmem:[#allocation9 + $0x58] sm:$0xff]  ;;  %v1397_v12 = vld [vmem:[#allocation9 + $0x50] sm:$0xff]  ;;  %s473_s11 = scalar_select %p472_p1, 0.1, 0.0 }
  0x44   : > { %452 = vmatpush.msra.mxu2 %v1381_v4  ;;  %513 = vmatpush.msra.mxu3 %v1381_v4  ;;  %v406_v13 = vld [vmem:[#allocation7 + $0x48] sm:$0xff]  ;;  %v405_v15 = vld [vmem:[#allocation7 + $0x40] sm:$0xff]  ;;  %v404_v17 = vld [vmem:[#allocation7 + $0x38] sm:$0xff]  ;;  %s503_s16 = scalar_select %p502_p4, 0.1, 0.0 }
  0x45   : > { %419 = vmatpush.msra.mxu0 %v410_v5  ;;  %v1401_v14 = vld [vmem:[#allocation9 + $0x48] sm:$0xff]  ;;  %v1405_v16 = vld [vmem:[#allocation9 + $0x40] sm:$0xff]  ;;  %v384_v18 = vld [vmem:[#allocation9 + $0x38] sm:$0xff]  ;;  %v477_v41 = vstv %s473_s11  ;;  %p533_p10 = scmp.lt.s32.totalorder %s532_s15, 9  ;;  %s563_s1 = sadd.s32 3, %s1433_s9 }
  0x46   : > { %453 = vmatpush.msra.mxu2 %v1385_v6  ;;  %514 = vmatpush.msra.mxu3 %v1385_v6  ;;  %v403_v19 = vld [vmem:[#allocation7 + $0x30] sm:$0xff]  ;;  %v402_v21 = vld [vmem:[#allocation7 + $0x28] sm:$0xff]  ;;  %v401_v23 = vld [vmem:[#allocation7 + $0x20] sm:$0xff]  ;;  %v508_v50 = vstv %s503_s16  ;;  %p564_p11 = scmp.lt.s32.totalorder %s563_s1, 9 }
  0x47   : > { %420 = vmatpush.msra.mxu0 %v409_v7  ;;  %v383_v20 = vld [vmem:[#allocation9 + $0x30] sm:$0xff]  ;;  %v382_v22 = vld [vmem:[#allocation9 + $0x28] sm:$0xff]  ;;  %v381_v24 = vld [vmem:[#allocation9 + $0x20] sm:$0xff]  ;;  %s534_s22 = scalar_select %p533_p10, 0.1, 0.0 }
  0x48   : > { %454 = vmatpush.msra.mxu2 %v1389_v8  ;;  %515 = vmatpush.msra.mxu3 %v1389_v8  ;;  %v400_v25 = vld [vmem:[#allocation7 + $0x18] sm:$0xff]  ;;  %v399_v27 = vld [vmem:[#allocation7 + $0x10] sm:$0xff]  ;;  %v398_v29 = vld [vmem:[#allocation7 + $0x8] sm:$0xff]  ;;  %s565_s13 = scalar_select %p564_p11, 0.1, 0.0 }
  0x49   : > { %421 = vmatpush.msra.mxu0 %v408_v9  ;;  %v380_v26 = vld [vmem:[#allocation9 + $0x18] sm:$0xff]  ;;  %v379_v28 = vld [vmem:[#allocation9 + $0x10] sm:$0xff]  ;;  %v378_v30 = vld [vmem:[#allocation9 + $0x8] sm:$0xff]  ;;  %v539_v59 = vstv %s534_s22 }
  0x4a   : > { %455 = vmatpush.msra.mxu2 %v1393_v10  ;;  %516 = vmatpush.msra.mxu3 %v1393_v10  ;;  %v397_v31 = vld [vmem:[#allocation7] sm:$0xff]  ;;  %v450_v34 = vld [vmem:[#allocation2] sm:$0xff]  ;;  %v394_v35 = vld [vmem:[%s1362_s8 + $0x8] sm:$0xff] }
  0x4b   : > { %422 = vmatpush.msra.mxu0 %v407_v11  ;;  %v393_v32 = vld [vmem:[%s1362_s8] sm:$0xff]  ;;  %v929_v36 = vld [vmem:[%s1498_s2] ss:$0 sm:$0xff]  ;;  %v395_v45 = vld [vmem:[%s1362_s8 + $0x10] sm:$0xff] }
  0x4c   : > { %456 = vmatpush.msra.mxu2 %v1397_v12  ;;  %517 = vmatpush.msra.mxu3 %v1397_v12  ;;  %v377_v33 = vld [vmem:[#allocation9] sm:$0xff]  ;;  %v396_v54 = vld [vmem:[%s1362_s8 + $0x18] sm:$0xff] }
  0x4d   : > { %423 = vmatpush.msra.mxu0 %v406_v13 }
  0x4e   : > { %457 = vmatpush.msra.mxu2 %v1401_v14  ;;  %518 = vmatpush.msra.mxu3 %v1401_v14 }
  0x4f   : > { %424 = vmatpush.msra.mxu0 %v405_v15 }
  0x50   : > { %458 = vmatpush.msra.mxu2 %v1405_v16  ;;  %519 = vmatpush.msra.mxu3 %v1405_v16 }
  0x51   : > { %425 = vmatpush.msra.mxu0 %v404_v17 }
  0x52   : > { %459 = vmatpush.msra.mxu2 %v384_v18  ;;  %520 = vmatpush.msra.mxu3 %v384_v18 }
  0x53   : > { %426 = vmatpush.msra.mxu0 %v403_v19 }
  0x54   : > { %460 = vmatpush.msra.mxu2 %v383_v20  ;;  %521 = vmatpush.msra.mxu3 %v383_v20 }
  0x55   : > { %427 = vmatpush.msra.mxu0 %v402_v21 }
  0x56   : > { %461 = vmatpush.msra.mxu2 %v382_v22  ;;  %522 = vmatpush.msra.mxu3 %v382_v22 }
  0x57   : > { %428 = vmatpush.msra.mxu0 %v401_v23 }
  0x58   : > { %462 = vmatpush.msra.mxu2 %v381_v24  ;;  %523 = vmatpush.msra.mxu3 %v381_v24 }
  0x59   : > { %429 = vmatpush.msra.mxu0 %v400_v25 }
  0x5a   : > { %463 = vmatpush.msra.mxu2 %v380_v26  ;;  %524 = vmatpush.msra.mxu3 %v380_v26 }
  0x5b   : > { %430 = vmatpush.msra.mxu0 %v399_v27 }
  0x5c   : > { %464 = vmatpush.msra.mxu2 %v379_v28  ;;  %525 = vmatpush.msra.mxu3 %v379_v28 }
  0x5d   : > { %431 = vmatpush.msra.mxu0 %v398_v29 }
  0x5e   : > { %465 = vmatpush.msra.mxu2 %v378_v30  ;;  %526 = vmatpush.msra.mxu3 %v378_v30 }
  0x5f   : > { %432 = vmatpush.msra.mxu0 %v397_v31 }
  0x60   : > { %433 = vmatmul.f32.vlgmr.msra.gmra.mxu0 %v393_v32  ;;  %466 = vmatpush.msra.mxu2 %v377_v33 }
  0x61   : > { %467 = vmatmul.f32.vlgmr.msra.gmra.mxu2 %v450_v34  ;;  %527 = vmatpush.msra.mxu3 %v377_v33 }
  0x62   : > { %481 = vmatpush.msrb.mxu2 %v1379_v3  ;;  %543 = vmatpush.msrb.mxu0 %v1379_v3  ;;  %v570_v3 = vstv %s565_s13 }
  0x64   : > { %482 = vmatpush.msrb.mxu2 %v1381_v4  ;;  %544 = vmatpush.msrb.mxu0 %v1381_v4 }
  0x66   : > { %483 = vmatpush.msrb.mxu2 %v1385_v6  ;;  %545 = vmatpush.msrb.mxu0 %v1385_v6 }
  0x68   : > { %484 = vmatpush.msrb.mxu2 %v1389_v8  ;;  %546 = vmatpush.msrb.mxu0 %v1389_v8 }
  0x69   : > { %436 = vmatmul.f32.gmra.mxu0 %v394_v35 }
  0x6a   : > { %485 = vmatpush.msrb.mxu2 %v1393_v10  ;;  %547 = vmatpush.msrb.mxu0 %v1393_v10 }
  0x6c   : > { %486 = vmatpush.msrb.mxu2 %v1397_v12  ;;  %548 = vmatpush.msrb.mxu0 %v1397_v12 }
  0x6e   : > { %487 = vmatpush.msrb.mxu2 %v1401_v14  ;;  %549 = vmatpush.msrb.mxu0 %v1401_v14 }
  0x70   : > { %488 = vmatpush.msrb.mxu2 %v1405_v16  ;;  %550 = vmatpush.msrb.mxu0 %v1405_v16 }
  0x71   : > { %439 = vmatmul.f32.gmra.mxu0 %v395_v45 }
  0x72   : > { %489 = vmatpush.msrb.mxu2 %v384_v18  ;;  %551 = vmatpush.msrb.mxu0 %v384_v18 }
  0x74   : > { %490 = vmatpush.msrb.mxu2 %v383_v20  ;;  %552 = vmatpush.msrb.mxu0 %v383_v20 }
  0x76   : > { %491 = vmatpush.msrb.mxu2 %v382_v22  ;;  %553 = vmatpush.msrb.mxu0 %v382_v22 }
  0x78   : > { %492 = vmatpush.msrb.mxu2 %v381_v24  ;;  %554 = vmatpush.msrb.mxu0 %v381_v24 }
  0x79   : > { %442 = vmatmul.f32.gmra.mxu0 %v396_v54 }
  0x7a   : > { %493 = vmatpush.msrb.mxu2 %v380_v26  ;;  %555 = vmatpush.msrb.mxu0 %v380_v26 }
  0x7c   : > { %494 = vmatpush.msrb.mxu2 %v379_v28  ;;  %556 = vmatpush.msrb.mxu0 %v379_v28 }
  0x7e   : > { %495 = vmatpush.msrb.mxu2 %v378_v30  ;;  %557 = vmatpush.msrb.mxu0 %v378_v30 }
  0x80   : > { %496 = vmatpush.msrb.mxu2 %v377_v33  ;;  %558 = vmatpush.msrb.mxu0 %v377_v33 }
  0xdd   : > { %v434_v37 = vpop.f32.mrf.mxu0 }
  0xde   : > { %v435_v38 = vadd.f32 %v929_v36, %v434_v37 }
  0xe4   : > { %v468_v39 = vpop.f32.mrf.mxu2 }
  0xe5   : > { %v475_v40 = vsub.f32 %v435_v38, %v468_v39 }
  0xe6   : > { %v437_v46 = vpop.f32.mrf.mxu0 }
  0xe7   : > { %930 = vtanh.f32 %v475_v40  ;;  %v438_v47 = vadd.f32 %v929_v36, %v437_v46 }
  0xed   : > { %v931_v42 = vpop.eup %930 }
  0xee   : > { %v478_v43 = vmul.f32 %v931_v42, %v477_v41  ;;  %v440_v55 = vpop.f32.mrf.mxu0 }
  0xef   : > { %v441_v56 = vadd.f32 %v929_v36, %v440_v55 }
  0xf0   : > { %v479_v44 = vadd.f32 %v478_v43, %v450_v34 }
  0xf2   : > { %480 = vst [vmem:[#allocation3 + $0x10] sm:$0xff] %v479_v44  ;;  %497 = vmatmul.f32.vlgmr.msrb.gmra.mxu2 %v479_v44 }
  0xf6   : > { %v443_v63 = vpop.f32.mrf.mxu0 }
  0xf7   : > { %v444_v0 = vadd.f32 %v929_v36, %v443_v63 }
 0x175   : > { %v498_v48 = vpop.f32.mrf.mxu2 }
 0x176   : > { %v506_v49 = vsub.f32 %v438_v47, %v498_v48 }
 0x178   : > { %932 = vtanh.f32 %v506_v49 }
 0x17e   : > { %v933_v51 = vpop.eup %932 }
 0x17f   : > { %v509_v52 = vmul.f32 %v933_v51, %v508_v50 }
 0x181   : > { %v510_v53 = vadd.f32 %v509_v52, %v479_v44 }
 0x183   : > { %511 = vst [vmem:[#allocation3] sm:$0xff] %v510_v53  ;;  %528 = vmatmul.f32.vlgmr.msra.gmra.mxu3 %v510_v53 }
 0x206   : > { %v529_v57 = vpop.f32.mrf.mxu3 }
 0x207   : > { %v537_v58 = vsub.f32 %v441_v56, %v529_v57 }
 0x209   : > { %934 = vtanh.f32 %v537_v58 }
 0x20f   : > { %v935_v60 = vpop.eup %934 }
 0x210   : > { %v540_v61 = vmul.f32 %v935_v60, %v539_v59 }
 0x212   : > { %v541_v62 = vadd.f32 %v540_v61, %v510_v53 }
 0x214   : > { %542 = vst [vmem:[#allocation3 + $0x18] sm:$0xff] %v541_v62  ;;  %559 = vmatmul.f32.vlgmr.msrb.gmra.mxu0 %v541_v62 }
 0x291   : > { %v560_v1 = vpop.f32.mrf.mxu0 }
 0x292   : > { %v568_v2 = vsub.f32 %v444_v0, %v560_v1 }
 0x294   : > { %936 = vtanh.f32 %v568_v2 }
 0x29a   : > { %v937_v4 = vpop.eup %936 }
 0x29b   : > { %v571_v5 = vmul.f32 %v937_v4, %v570_v3 }
 0x29c   : > { %578 = sbr.rel (%p814_p12) target bundleno = 674 (0x2a2), region = 68 }
 0x29d   : > { %v572_v6 = vadd.f32 %v571_v5, %v541_v62 }
 0x29f   : > { %573 = vst [vmem:[#allocation3 + $0x8] sm:$0xff] %v572_v6 }
 0x2a0   : > { %574 = vst [vmem:[#allocation2] sm:$0xff] %v572_v6 }
 0x2a1   : > { %579 = vst [vmem:[#allocation13] sm:$0xff] %v572_v6 }
 0x2a2 PF: > { %v599_v7 = vld [vmem:[#allocation10 + $0x78] sm:$0xff]  ;;  %v598_v8 = vld [vmem:[#allocation10 + $0x70] sm:$0xff]  ;;  %v597_v9 = vld [vmem:[#allocation10 + $0x68] sm:$0xff]  ;;  %s1189_s17 = smov [#allocation13]   ;;  %s670_s23 = sshll.u32 %s1503_s7, 4  ;;  %s671_s23 = int_to_ptr.hbm [resolvable:$true] %s670_s23 }
 0x2a3   : > { %604 = vmatpush.msra.mxu1 %v599_v7  ;;  %v596_v10 = vld [vmem:[#allocation10 + $0x60] sm:$0xff]  ;;  %v595_v11 = vld [vmem:[#allocation10 + $0x58] sm:$0xff]  ;;  %v594_v12 = vld [vmem:[#allocation10 + $0x50] sm:$0xff]  ;;  %s668_s20 = sshll.u32 %s1189_s17, 4  ;;  %s823_s24 = sshll.u32 %s1173_s27, 5  ;;  %s669_s20 = int_to_ptr.vmem [resolvable:$true] %s668_s20 }
 0x2a4   : > { %v593_v13 = vld [vmem:[#allocation10 + $0x48] sm:$0xff]  ;;  %v592_v14 = vld [vmem:[#allocation10 + $0x40] sm:$0xff]  ;;  %v591_v15 = vld [vmem:[#allocation10 + $0x38] sm:$0xff]  ;;  %840 = dma.vmem_to_hbm [thread:$0]  (%p1270_p2), %s669_s20, 128, %s671_s23, [#allocation14]  }
 0x2a5   : > { %605 = vmatpush.msra.mxu1 %v598_v8  ;;  %v590_v16 = vld [vmem:[#allocation10 + $0x30] sm:$0xff]  ;;  %v589_v17 = vld [vmem:[#allocation10 + $0x28] sm:$0xff]  ;;  %v588_v18 = vld [vmem:[#allocation10 + $0x20] sm:$0xff]  ;;  %s650_s12 = scalar_lea.hbm %s1502_s6, %s823_s24  ;;  %s651_s16 = sshll.u32 %s1376_s3, 4  ;;  %s652_s16 = int_to_ptr.vmem [resolvable:$true] %s651_s16 }
 0x2a6   : > { %v587_v19 = vld [vmem:[#allocation10 + $0x18] sm:$0xff]  ;;  %v586_v20 = vld [vmem:[#allocation10 + $0x10] sm:$0xff]  ;;  %v585_v21 = vld [vmem:[#allocation10 + $0x8] sm:$0xff]  ;;  %s653_s15 = sshll.u32 %s650_s12, 4  ;;  %s638_s22 = scalar_lea.sflag [#allocation6], %s1358_s18  ;;  %s654_s15 = int_to_ptr.hbm [resolvable:$true] %s653_s15 }
 0x2a7   : > { %606 = vmatpush.msra.mxu1 %v597_v9  ;;  %v584_v22 = vld [vmem:[#allocation10] sm:$0xff]  ;;  %v580_v23 = vld [vmem:[#allocation3 + $0x10] sm:$0xff]  ;;  %v582_v25 = vld [vmem:[#allocation3 + $0x18] sm:$0xff]  ;;  %s1101_s1 = sshra.s32 %s654_s15, 4  ;;  %s1107_s20 = scalar_lea.hbm %s1502_s6, 96  ;;  %s1102_s1 = int_to_ptr.hbm [resolvable:$true] %s1101_s1 }
 0x2a8   : > { %v581_v24 = vld [vmem:[#allocation3] sm:$0xff]  ;;  %v583_v26 = vld [vmem:[#allocation3 + $0x8] sm:$0xff]  ;;  %v938_v27 = vld [vmem:[%s1501_s5] ss:$0 sm:$0xff]  ;;  %s1103_s13 = scalar_lea.hbm %s1102_s1, 32  ;;  %p1108_p7 = scmp.lt.s32.totalorder %s1102_s1, %s1502_s6 }
 0x2a9   : > { %607 = vmatpush.msra.mxu1 %v596_v10  ;;  %p1104_p13 = scmp.ne.s32.totalorder %s1102_s1, %s1103_s13  ;;  %p1109_p9 = scmp.lt.s32.totalorder %s1107_s20, %s1103_s13 }
 0x2ab   : > { %608 = vmatpush.msra.mxu1 %v595_v11  ;;  %p1105_p0 = pnand %p1104_p13, %p1335_p3  ;;  %p1110_p8 = por %p1109_p9, %p1108_p7 }
 0x2ad   : > { %609 = vmatpush.msra.mxu1 %v594_v12  ;;  %p1106_p5 = pneg %p1105_p0 }
 0x2af   : > { %610 = vmatpush.msra.mxu1 %v593_v13  ;;  %p1111_p1 = pnand %p1110_p8, %p1106_p5 }
 0x2b1   : > { %611 = vmatpush.msra.mxu1 %v592_v14 }
 0x2b3   : > { %612 = vmatpush.msra.mxu1 %v591_v15 }
 0x2b5   : > { %613 = vmatpush.msra.mxu1 %v590_v16 }
 0x2b7   : > { %614 = vmatpush.msra.mxu1 %v589_v17 }
 0x2b9   : > { %615 = vmatpush.msra.mxu1 %v588_v18 }
 0x2bb   : > { %616 = vmatpush.msra.mxu1 %v587_v19 }
 0x2bd   : > { %617 = vmatpush.msra.mxu1 %v586_v20 }
 0x2bf   : > { %618 = vmatpush.msra.mxu1 %v585_v21 }
 0x2c1   : > { %619 = vmatpush.msra.mxu1 %v584_v22 }
 0x2c2   : > { %620 = vmatmul.f32.vlgmr.msra.gmra.mxu1 %v580_v23 }
 0x2ca   : > { %623 = vmatmul.f32.gmra.mxu1 %v581_v24 }
 0x2d2   : > { %626 = vmatmul.f32.gmra.mxu1 %v582_v25 }
 0x2da   : > { %629 = vmatmul.f32.gmra.mxu1 %v583_v26 }
 0x33f   : > { %v621_v28 = vpop.f32.mrf.mxu1 }
 0x340   : > { %v622_v29 = vadd.f32 %v938_v27, %v621_v28 }
 0x342   : > { %633 = vst [vmem:[%s1376_s3] sm:$0xff] %v622_v29 }
 0x347   : > { %v624_v30 = vpop.f32.mrf.mxu1 }
 0x348   : > { %v625_v31 = vadd.f32 %v938_v27, %v624_v30 }
 0x34a   : > { %634 = vst [vmem:[%s1376_s3 + $0x8] sm:$0xff] %v625_v31 }
 0x34f   : > { %v627_v32 = vpop.f32.mrf.mxu1 }
 0x350   : > { %v628_v33 = vadd.f32 %v938_v27, %v627_v32 }
 0x352   : > { %635 = vst [vmem:[%s1376_s3 + $0x10] sm:$0xff] %v628_v33 }
 0x357   : > { %v630_v34 = vpop.f32.mrf.mxu1 }
 0x358   : > { %v631_v35 = vadd.f32 %v938_v27, %v630_v34 }
 0x35a   : > { %636 = vst [vmem:[%s1376_s3 + $0x18] sm:$0xff] %v631_v35 }
 0x35b   : > { %1114 = shalt.err (!%p1111_p1)
}
 0x35c   : > { %s1190_s18 = smov 128   ;;  %s1191_s3 = smov 8  }
 0x35d   : > { %838 = dma.vmem_to_hbm [thread:$0]  (%p1335_p3), %s652_s16, 512, %s654_s15, %s638_s22, %s1190_s18, %s1190_s18, %s1191_s3  }
 0x35e   : > { %1152 = dma.done.wait (%p1270_p2), [#allocation14], 128  }
 0x35f   : > { %1154 = vsyncadd (%p1270_p2), [#allocation14], 4294967168 }
 0x360 PF: > { %s1528_s23 = sld [smem:[#allocation20_spill]]  ;;  %p871_p4 = scmp.ge.s32.totalorder %s1181_s29, 2 }
 0x362   : > { %p859_p10 = pnand %p871_p4, %p1281_p6 }
 0x364   : > { %p860_p11 = pneg %p859_p10 }
 0x366   : > { %s687_s4 = sand.u32 1, %s1528_s23  }
 0x367   : > { %s688_s24 = scalar_lea.sflag [#allocation6], %s687_s4 }
 0x368   : > { %1156 = dma.done.wait (%p860_p11), %s688_s24, 512  }
 0x369   : > { %1158 = vsyncadd (%p860_p11), %s688_s24, 4294966784  ;;  %s27_s29 = sadd.s32 1, %s1181_s29   ;;  %s1530_s10 = sld [smem:[#allocation22_spill]] }
 0x36a   : > { %p24_p3 = scmp.ge.s32.totalorder %s27_s29, 5   ;;  %s1531_s24 = smov %s1165_s25 }
 0x36b   : > { %s1532_s25 = smov %s1169_s26  ;;  %s1533_s26 = smov %s1344_s14 }
 0x36c   : > { %s1534_s27 = smov %s1177_s28  ;;  %26 = sbr.rel (!%p24_p3) target bundleno = 13 (0xd), region = 121 }
 0x36f   : > { %s1535_s28 = smov %s1530_s10 }
 0x371   :  { %694 = vsyncpa [#allocation5], 1 }
 0x372   :  { %696 = vsyncpa [#allocation5 + $0x1], 1 }
 0x373   :  { %697 = vsyncpa [#allocation8], 1 }
 0x374   :  { %698 = vsyncpa [#allocation11], 1 }
 0x375   :  { %699 = vsyncpa [#allocation6], 1 }
 0x376   :  { %701 = vsyncpa [#allocation6 + $0x1], 1 }
 0x377   :  { %702 = vsyncpa [#allocation14], 1 }

</bundles_post_ra>
